<compile_context>
chip_gen: v7x
topology: tpu7x:2x2x1
jax: 0.10.0
libtpu: 0.0.40
codegen_flags: <defaults>
</compile_context>

<pallas_src>
import functools

import jax
import jax.numpy as jnp
from jax import lax
from jax.experimental import pallas as pl
from jax.experimental.pallas import tpu as pltpu

KSIZE = 7   # SpatialAttention kernel_size
PAD = 3     # SpatialAttention padding


# ----------------------------- kernel -----------------------------

def _bottleneck_kernel(x_ref, w1t_ref, w2t_ref, tconv_ref, o_ref, *, hw_real, hw_pad):
    """One grid step: Nb images in lane-dense (Nb, C, HWp) layout.

    x_ref:     (Nb, C, HWp)     input images (flattened, lane-padded spatial)
    w1t_ref:   (C, Cr)          ChannelAttention fc1 weight, pre-transposed
    w2t_ref:   (Cr, C)          ChannelAttention fc2 weight, pre-transposed
    tconv_ref: (2*HWp, HWp)     SpatialAttention 7x7 conv as stacked Toeplitz
                                matrices (rows [:HWp] = avg map, [HWp:] = max map)
    o_ref:     (Nb, C, HWp)     output
    """
    xv = x_ref[...].astype(jnp.float32)                        # (Nb, C, HWp)
    nb = xv.shape[0]

    # ---------------- ChannelAttention ----------------
    # Global average pool: padded lanes are zero, divide by the real H*W.
    avg_c = jnp.sum(xv, axis=-1) * (1.0 / hw_real)             # (Nb, C) lane reduce
    if hw_pad > hw_real:
        lane = lax.broadcasted_iota(jnp.int32, xv.shape, 2)
        max_c = jnp.max(jnp.where(lane < hw_real, xv, -jnp.inf), axis=-1)
    else:
        max_c = jnp.max(xv, axis=-1)                           # (Nb, C)

    # Fused shared MLP: one matmul pair for both pooled vectors.
    pooled = jnp.concatenate([avg_c, max_c], axis=0)           # (2*Nb, C)
    h = jnp.maximum(
        jnp.dot(pooled, w1t_ref[...], preferred_element_type=jnp.float32), 0.0)
    att2 = jnp.dot(h, w2t_ref[...], preferred_element_type=jnp.float32)  # (2*Nb, C)
    ca = jax.nn.sigmoid(att2[:nb] + att2[nb:])                 # (Nb, C)

    # Bottleneck: out1 = relu(sigmoid(att) * x) * x.
    # NOTE: this ReLU is NOT redundant (x may be negative); out1 >= 0 always.
    out1 = xv * jnp.maximum(ca[:, :, None] * xv, 0.0)          # (Nb, C, HWp)

    # ---------------- SpatialAttention ----------------
    avg_s = jnp.mean(out1, axis=1)                             # (Nb, HWp) sublane reduce
    max_s = jnp.max(out1, axis=1)                               # (Nb, HWp)

    # Conv2d(2, 1, 7, padding=3, bias=False) == one MXU matmul vs stacked Toeplitz.
    pooled_s = jnp.concatenate([avg_s, max_s], axis=-1).astype(tconv_ref.dtype)
    conv = jnp.dot(pooled_s, tconv_ref[...],
                   preferred_element_type=jnp.float32)          # (Nb, HWp)
    sa = jax.nn.sigmoid(conv)

    # out1 >= 0 and sigmoid > 0, so SpatialAttention's inner ReLU and the final
    # Bottleneck ReLU are exact no-ops: out = sigmoid(conv) * out1 * out1.
    o_ref[...] = (sa[:, None, :] * out1 * out1).astype(o_ref.dtype)


# ----------------------------- wrapper helpers -----------------------------

def _round_up(x, m):
    return ((x + m - 1) // m) * m


def _toeplitz_from_conv(wsa, H, W):
    """Dense matmul form of Conv2d(2, 1, 7, padding=3, bias=False).

    wsa: (1, 2, K, K) OIHW weights (input channel 0 = avg map, 1 = max map).
    Returns T of shape (2, H*W, H*W), f32, so conv_flat = avg @ T[0] + max @ T[1].
    Zero padding of the conv is encoded by zeroed entries.
    """
    w = jnp.asarray(wsa, jnp.float32).reshape(2, KSIZE, KSIZE)
    hi = jnp.arange(H)
    wi = jnp.arange(W)
    dh = hi[:, None] - hi[None, :] + PAD        # (h_in, h_out) -> kernel row index
    dw = wi[:, None] - wi[None, :] + PAD        # (w_in, w_out) -> kernel col index
    vh = (dh >= 0) & (dh < KSIZE)
    vw = (dw >= 0) & (dw < KSIZE)
    dh = jnp.clip(dh, 0, KSIZE - 1)
    dw = jnp.clip(dw, 0, KSIZE - 1)
    t = w[:, dh[:, None, :, None], dw[None, :, None, :]]       # (2, H, W, H, W)
    mask = (vh[:, None, :, None] & vw[None, :, None, :]).astype(jnp.float32)
    return (t * mask[None]).reshape(2, H * W, H * W)


def _has_two_tensorcores():
    """True when the attached chip has 2 TensorCores (v7x); safe fallback: False."""
    try:
        kind = jax.local_devices()[0].device_kind.lower()
    except Exception:
        return False
    return "v7" in kind


def _pick_block_batch(n, per_image_fp_bytes, *, target_bytes, min_split_bytes=512 * 1024,
                      two_cores=False):
    """Images per grid step, sized against the full per-step VMEM footprint."""
    nb = max(1, int(target_bytes // max(1, per_image_fp_bytes)))
    if two_cores and n >= 2:
        # Keep >= 2 grid steps so both TensorCores get work, but never shrink a
        # block below ~512 KiB just for megacore sharding.
        half = max(1, n // 2)
        if half * per_image_fp_bytes >= min_split_bytes:
            nb = min(nb, half)
    return max(1, min(nb, n))


def prepare_bottleneck_weights(w1, w2, wsa, H, W):
    """One-time weight preparation (call once, reuse across bottleneck_apply calls)."""
    HW = H * W
    HWp = _round_up(HW, 128)

    w1t = jnp.transpose(jnp.asarray(w1, jnp.float32))   # (C, Cr)
    w2t = jnp.transpose(jnp.asarray(w2, jnp.float32))   # (Cr, C)

    tconv = _toeplitz_from_conv(wsa, H, W)               # (2, HW, HW) f32
    if HWp != HW:
        tconv = jnp.pad(tconv, ((0, 0), (0, HWp - HW), (0, HWp - HW)))
    # Keep the Toeplitz weight in f32 while small; drop to bf16 once it is large
    # (halves resident VMEM and uses the native bf16 MXU path on v6e/v7x).
    tdtype = jnp.float32 if 2 * HWp * HWp * 4 <= (4 << 20) else jnp.bfloat16
    tconv2 = tconv.astype(tdtype).reshape(2 * HWp, HWp)  # stacked [avg; max] rows

    return dict(w1t=w1t, w2t=w2t, tconv=tconv2, H=H, W=W, HW=HW, HWp=HWp)


def bottleneck_apply(x, params):
    """x: (N, C, H, W); params from prepare_bottleneck_weights."""
    N, C, H, W = x.shape
    assert H == params["H"] and W == params["W"]
    HW, HWp = params["HW"], params["HWp"]
    w1t, w2t, tconv2 = params["w1t"], params["w2t"], params["tconv"]
    Cr = w1t.shape[1]

    xf = x.reshape(N, C, HW)                     # contiguous reshape
    if HWp != HW:
        xf = jnp.pad(xf, ((0, 0), (0, 0), (0, HWp - HW)))

    itemsize = x.dtype.itemsize
    # Full per-image footprint: double-buffered in + out blocks plus ~3 f32
    # temporaries (xv / out1 / out2-sized slabs).
    per_image = C * HWp * (2 * itemsize + 2 * itemsize + 3 * 4)
    weight_bytes = ((w1t.size + w2t.size) * 4
                    + tconv2.size * tconv2.dtype.itemsize)
    # Leave room for the (possibly double-buffered) weights inside the target.
    target = max(2 << 20, (16 << 20) - 2 * weight_bytes)
    nb = _pick_block_batch(N, per_image, target_bytes=target,
                           two_cores=_has_two_tensorcores())

    Np = _round_up(N, nb)
    if Np != N:
        xf = jnp.pad(xf, ((0, Np - N), (0, 0), (0, 0)))

    footprint = nb * per_image + 2 * weight_bytes
    vmem_limit = int(min(56 << 20, max(16 << 20, footprint + (8 << 20))))

    grid = (Np // nb,)
    kernel = functools.partial(_bottleneck_kernel, hw_real=HW, hw_pad=HWp)

    def _call(single_buffer_weights):
        wkw = dict(pipeline_mode=pl.Buffered(1)) if single_buffer_weights else {}
        return pl.pallas_call(
            kernel,
            out_shape=jax.ShapeDtypeStruct((Np, C, HWp), x.dtype),
            grid=grid,
            in_specs=[
                pl.BlockSpec((nb, C, HWp), lambda n: (n, 0, 0)),
                pl.BlockSpec((C, Cr), lambda n: (0, 0), **wkw),
                pl.BlockSpec((Cr, C), lambda n: (0, 0), **wkw),
                pl.BlockSpec((2 * HWp, HWp), lambda n: (0, 0), **wkw),
            ],
            out_specs=pl.BlockSpec((nb, C, HWp), lambda n: (n, 0, 0)),
            compiler_params=pltpu.CompilerParams(
                dimension_semantics=("parallel",),
                vmem_limit_bytes=vmem_limit,
            ),
        )(xf, w1t, w2t, tconv2)

    try:
        out_flat = _call(True)
    except Exception:
        # pipeline_mode=pl.Buffered(1) unsupported on this jax build -> default buffering.
        out_flat = _call(False)

    return out_flat[:N, :, :HW].reshape(N, C, H, W)


def bottleneck_pallas(x, w1, w2, wsa):
    """Convenience wrapper: prepare weights + apply (prefer hoisting prepare)."""
    _, _, H, W = x.shape
    return bottleneck_apply(x, prepare_bottleneck_weights(w1, w2, wsa, H, W))


# ----------------------------- reference -----------------------------

def reference_bottleneck(x, w1, w2, wsa):
    """Pure-JAX reference mirroring the PyTorch forward pass."""
    avg_c = jnp.mean(x, axis=(2, 3), keepdims=True)
    max_c = jnp.max(x, axis=(2, 3), keepdims=True)

    def mlp(p):
        h = jnp.maximum(jnp.einsum('jc,ncab->njab', w1, p), 0.0)
        return jnp.einsum('cj,njab->ncab', w2, h)

    att = mlp(avg_c) + mlp(max_c)
    ca = jnp.maximum(jax.nn.sigmoid(att) * x, 0.0)            # ChannelAttention output
    out1 = ca * x

    avg_s = jnp.mean(out1, axis=1, keepdims=True)
    max_s = jnp.max(out1, axis=1, keepdims=True)
    cat = jnp.concatenate([avg_s, max_s], axis=1)              # (N, 2, H, W)
    conv = lax.conv_general_dilated(
        cat, wsa, window_strides=(1, 1), padding=((PAD, PAD), (PAD, PAD)),
        dimension_numbers=('NCHW', 'OIHW', 'NCHW'))
    sa = jnp.maximum(jax.nn.sigmoid(conv) * out1, 0.0)         # SpatialAttention output
    out2 = sa * out1
    return jnp.maximum(out2, 0.0)


if __name__ == "__main__":
    N, C, H, W = 2, 32, 16, 16
    ratio = 16
    Cr = C // ratio

    key = jax.random.PRNGKey(0)
    kx, k1, k2, k3 = jax.random.split(key, 4)
    x = jax.random.normal(kx, (N, C, H, W), dtype=jnp.float32)
    # ChannelAttention fc1 / fc2 (1x1 convs, no bias) -> plain matrices
    w1 = jax.random.normal(k1, (Cr, C), dtype=jnp.float32) * 0.3
    w2 = jax.random.normal(k2, (C, Cr), dtype=jnp.float32) * 0.3
    # SpatialAttention conv1 (Conv2d(2, 1, 7, padding=3, bias=False)), OIHW
    wsa = jax.random.normal(k3, (1, 2, KSIZE, KSIZE), dtype=jnp.float32) * 0.1

    params = prepare_bottleneck_weights(w1, w2, wsa, H, W)   # one-time prep
    out = bottleneck_apply(x, params)
    out = jax.block_until_ready(out)

    ref = reference_bottleneck(x, w1, w2, wsa)
    assert out.shape == ref.shape
    max_err = jnp.max(jnp.abs(out - ref))
    if not jnp.allclose(out, ref, atol=1e-3, rtol=1e-3):
        raise AssertionError(f"Pallas/reference mismatch, max abs err {max_err}")

    print("KERNEL_OK")
</pallas_src>

<mosaic_0001>
module attributes {stable_mosaic.version = 11 : i64} {
  func.func @_bottleneck_kernel(%arg0: i32, %arg1: memref<2x32x256xf32, #tpu.memory_space<vmem>>, %arg2: memref<32x2xf32, #tpu.memory_space<vmem>>, %arg3: memref<2x32xf32, #tpu.memory_space<vmem>>, %arg4: memref<512x256xf32, #tpu.memory_space<vmem>>, %arg5: memref<2x32x256xf32, #tpu.memory_space<vmem>>) attributes {dimension_semantics = [#tpu.dimension_semantics<parallel>], iteration_bounds = array<i64: 1>, scalar_prefetch = 0 : i64, scratch_operands = 0 : i64, tpu.core_type = #tpu.core_type<tc>, window_params = [{transform_indices = @transform_0, window_bounds = array<i64: 2, 32, 256>}, {pipeline_mode = #tpu.pipeline_mode<synchronous>, transform_indices = @transform_1, window_bounds = array<i64: 32, 2>}, {pipeline_mode = #tpu.pipeline_mode<synchronous>, transform_indices = @transform_2, window_bounds = array<i64: 2, 32>}, {pipeline_mode = #tpu.pipeline_mode<synchronous>, transform_indices = @transform_3, window_bounds = array<i64: 512, 256>}, {transform_indices = @transform_4, window_bounds = array<i64: 2, 32, 256>}]} {
    %c0 = arith.constant 0 : index
    %c0_0 = arith.constant 0 : index
    %c0_1 = arith.constant 0 : index
    %0 = vector.load %arg1[%c0, %c0_0, %c0_1] : memref<2x32x256xf32, #tpu.memory_space<vmem>>, vector<2x32x256xf32>
    %cst = arith.constant dense<0.000000e+00> : vector<2x32xf32>
    %1 = vector.multi_reduction <add>, %0, %cst [2] : vector<2x32x256xf32> to vector<2x32xf32>
    %cst_2 = arith.constant 3.906250e-03 : f32
    %2 = vector.broadcast %cst_2 : f32 to vector<2x32xf32>
    %3 = arith.mulf %1, %2 : vector<2x32xf32>
    %cst_3 = arith.constant dense<0xFF800000> : vector<2x32xf32>
    %4 = vector.multi_reduction <maximumf>, %0, %cst_3 [2] : vector<2x32x256xf32> to vector<2x32xf32>
    %5 = tpu.concatenate %3, %4 in 0 : vector<2x32xf32>, vector<2x32xf32> -> vector<4x32xf32>
    %c0_4 = arith.constant 0 : index
    %c0_5 = arith.constant 0 : index
    %6 = vector.load %arg2[%c0_4, %c0_5] : memref<32x2xf32, #tpu.memory_space<vmem>>, vector<32x2xf32>
    %cst_6 = arith.constant dense<0.000000e+00> : vector<4x2xf32>
    %7 = tpu.matmul %5, %6, %cst_6 {dimension_numbers = #tpu.dot_dimension_numbers<[1], [0], [0], [1], [0, 0, 1, 1], [], []>} : vector<4x32xf32>, vector<32x2xf32>, vector<4x2xf32> -> vector<4x2xf32>
    %cst_7 = arith.constant 0.000000e+00 : f32
    %8 = vector.broadcast %cst_7 : f32 to vector<4x2xf32>
    %9 = arith.maximumf %7, %8 : vector<4x2xf32>
    %c0_8 = arith.constant 0 : index
    %c0_9 = arith.constant 0 : index
    %10 = vector.load %arg3[%c0_8, %c0_9] : memref<2x32xf32, #tpu.memory_space<vmem>>, vector<2x32xf32>
    %cst_10 = arith.constant dense<0.000000e+00> : vector<4x32xf32>
    %11 = tpu.matmul %9, %10, %cst_10 {dimension_numbers = #tpu.dot_dimension_numbers<[1], [0], [0], [1], [0, 0, 1, 1], [], []>} : vector<4x2xf32>, vector<2x32xf32>, vector<4x32xf32> -> vector<4x32xf32>
    %12 = vector.extract_strided_slice %11 {offsets = [0, 0], sizes = [2, 32], strides = [1, 1]} : vector<4x32xf32> to vector<2x32xf32>
    %13 = vector.extract_strided_slice %11 {offsets = [2, 0], sizes = [2, 32], strides = [1, 1]} : vector<4x32xf32> to vector<2x32xf32>
    %14 = arith.addf %12, %13 : vector<2x32xf32>
    %15 = arith.negf %14 : vector<2x32xf32>
    %16 = math.exp %15 : vector<2x32xf32>
    %cst_11 = arith.constant 1.000000e+00 : f32
    %17 = vector.broadcast %cst_11 : f32 to vector<2x32xf32>
    %18 = arith.addf %17, %16 : vector<2x32xf32>
    %19 = arith.divf %17, %18 : vector<2x32xf32>
    %20 = vector.shape_cast %19 : vector<2x32xf32> to vector<2x32x1xf32>
    %21 = vector.broadcast %20 : vector<2x32x1xf32> to vector<2x32x256xf32>
    %22 = arith.mulf %21, %0 : vector<2x32x256xf32>
    %cst_12 = arith.constant 0.000000e+00 : f32
    %23 = vector.broadcast %cst_12 : f32 to vector<2x32x256xf32>
    %24 = arith.maximumf %22, %23 : vector<2x32x256xf32>
    %25 = arith.mulf %0, %24 : vector<2x32x256xf32>
    %cst_13 = arith.constant dense<0.000000e+00> : vector<2x256xf32>
    %26 = vector.multi_reduction <add>, %25, %cst_13 [1] : vector<2x32x256xf32> to vector<2x256xf32>
    %cst_14 = arith.constant 3.200000e+01 : f32
    %27 = vector.broadcast %cst_14 : f32 to vector<2x256xf32>
    %28 = arith.divf %26, %27 : vector<2x256xf32>
    %cst_15 = arith.constant dense<0xFF800000> : vector<2x256xf32>
    %29 = vector.multi_reduction <maximumf>, %25, %cst_15 [1] : vector<2x32x256xf32> to vector<2x256xf32>
    %30 = tpu.concatenate %28, %29 in 1 : vector<2x256xf32>, vector<2x256xf32> -> vector<2x512xf32>
    %c0_16 = arith.constant 0 : index
    %c0_17 = arith.constant 0 : index
    %31 = vector.load %arg4[%c0_16, %c0_17] : memref<512x256xf32, #tpu.memory_space<vmem>>, vector<512x256xf32>
    %cst_18 = arith.constant dense<0.000000e+00> : vector<2x256xf32>
    %32 = tpu.matmul %30, %31, %cst_18 {dimension_numbers = #tpu.dot_dimension_numbers<[1], [0], [0], [1], [0, 0, 1, 1], [], []>} : vector<2x512xf32>, vector<512x256xf32>, vector<2x256xf32> -> vector<2x256xf32>
    %33 = arith.negf %32 : vector<2x256xf32>
    %34 = math.exp %33 : vector<2x256xf32>
    %cst_19 = arith.constant 1.000000e+00 : f32
    %35 = vector.broadcast %cst_19 : f32 to vector<2x256xf32>
    %36 = arith.addf %35, %34 : vector<2x256xf32>
    %37 = arith.divf %35, %36 : vector<2x256xf32>
    %38 = vector.shape_cast %37 : vector<2x256xf32> to vector<2x1x256xf32>
    %39 = vector.broadcast %38 : vector<2x1x256xf32> to vector<2x32x256xf32>
    %40 = arith.mulf %39, %25 : vector<2x32x256xf32>
    %41 = arith.mulf %40, %25 : vector<2x32x256xf32>
    %c0_20 = arith.constant 0 : index
    %c0_21 = arith.constant 0 : index
    %c0_22 = arith.constant 0 : index
    %42 = vector.load %arg5[%c0_20, %c0_21, %c0_22] : memref<2x32x256xf32, #tpu.memory_space<vmem>>, vector<2x32x256xf32>
    tpu.vector_store %arg5[%c0_20, %c0_21, %c0_22], %41 {strides = array<i32>} : memref<2x32x256xf32, #tpu.memory_space<vmem>>, vector<2x32x256xf32>,
    return
  }
  func.func @transform_0(%arg0: i32) -> (i32, i32, i32) {
    %c0_i32 = arith.constant 0 : i32
    %c0_i32_0 = arith.constant 0 : i32
    %c0_i32_1 = arith.constant 0 : i32
    return %arg0, %c0_i32, %c0_i32_0 : i32, i32, i32
  }
  func.func @transform_1(%arg0: i32) -> (i32, i32) {
    %c0_i32 = arith.constant 0 : i32
    %c0_i32_0 = arith.constant 0 : i32
    %c0_i32_1 = arith.constant 0 : i32
    return %c0_i32, %c0_i32_0 : i32, i32
  }
  func.func @transform_2(%arg0: i32) -> (i32, i32) {
    %c0_i32 = arith.constant 0 : i32
    %c0_i32_0 = arith.constant 0 : i32
    %c0_i32_1 = arith.constant 0 : i32
    return %c0_i32, %c0_i32_0 : i32, i32
  }
  func.func @transform_3(%arg0: i32) -> (i32, i32) {
    %c0_i32 = arith.constant 0 : i32
    %c0_i32_0 = arith.constant 0 : i32
    %c0_i32_1 = arith.constant 0 : i32
    return %c0_i32, %c0_i32_0 : i32, i32
  }
  func.func @transform_4(%arg0: i32) -> (i32, i32, i32) {
    %c0_i32 = arith.constant 0 : i32
    %c0_i32_0 = arith.constant 0 : i32
    %c0_i32_1 = arith.constant 0 : i32
    return %arg0, %c0_i32, %c0_i32_0 : i32, i32, i32
  }
}

module attributes {stable_mosaic.version = 11 : i64} {
  func.func @_bottleneck_kernel(%arg0: i32, %arg1: memref<2x32x256xf32, #tpu.memory_space<vmem>>, %arg2: memref<32x2xf32, #tpu.memory_space<vmem>>, %arg3: memref<2x32xf32, #tpu.memory_space<vmem>>, %arg4: memref<512x256xf32, #tpu.memory_space<vmem>>, %arg5: memref<2x32x256xf32, #tpu.memory_space<vmem>>) attributes {dimension_semantics = [#tpu.dimension_semantics<parallel>], iteration_bounds = array<i64: 1>, scalar_prefetch = 0 : i64, scratch_operands = 0 : i64, tpu.core_type = #tpu.core_type<tc>, window_params = [{transform_indices = @transform_0, window_bounds = array<i64: 2, 32, 256>}, {pipeline_mode = #tpu.pipeline_mode<synchronous>, transform_indices = @transform_1, window_bounds = array<i64: 32, 2>}, {pipeline_mode = #tpu.pipeline_mode<synchronous>, transform_indices = @transform_2, window_bounds = array<i64: 2, 32>}, {pipeline_mode = #tpu.pipeline_mode<synchronous>, transform_indices = @transform_3, window_bounds = array<i64: 512, 256>}, {transform_indices = @transform_4, window_bounds = array<i64: 2, 32, 256>}]} {
    %c0 = arith.constant 0 : index
    %c0_0 = arith.constant 0 : index
    %c0_1 = arith.constant 0 : index
    %0 = vector.load %arg1[%c0, %c0_0, %c0_1] : memref<2x32x256xf32, #tpu.memory_space<vmem>>, vector<2x32x256xf32>
    %cst = arith.constant dense<0.000000e+00> : vector<2x32xf32>
    %1 = vector.multi_reduction <add>, %0, %cst [2] : vector<2x32x256xf32> to vector<2x32xf32>
    %cst_2 = arith.constant 3.906250e-03 : f32
    %2 = vector.broadcast %cst_2 : f32 to vector<2x32xf32>
    %3 = arith.mulf %1, %2 : vector<2x32xf32>
    %cst_3 = arith.constant dense<0xFF800000> : vector<2x32xf32>
    %4 = vector.multi_reduction <maximumf>, %0, %cst_3 [2] : vector<2x32x256xf32> to vector<2x32xf32>
    %5 = tpu.concatenate %3, %4 in 0 : vector<2x32xf32>, vector<2x32xf32> -> vector<4x32xf32>
    %c0_4 = arith.constant 0 : index
    %c0_5 = arith.constant 0 : index
    %6 = vector.load %arg2[%c0_4, %c0_5] : memref<32x2xf32, #tpu.memory_space<vmem>>, vector<32x2xf32>
    %cst_6 = arith.constant dense<0.000000e+00> : vector<4x2xf32>
    %7 = tpu.matmul %5, %6, %cst_6 {dimension_numbers = #tpu.dot_dimension_numbers<[1], [0], [0], [1], [0, 0, 1, 1], [], []>} : vector<4x32xf32>, vector<32x2xf32>, vector<4x2xf32> -> vector<4x2xf32>
    %cst_7 = arith.constant 0.000000e+00 : f32
    %8 = vector.broadcast %cst_7 : f32 to vector<4x2xf32>
    %9 = arith.maximumf %7, %8 : vector<4x2xf32>
    %c0_8 = arith.constant 0 : index
    %c0_9 = arith.constant 0 : index
    %10 = vector.load %arg3[%c0_8, %c0_9] : memref<2x32xf32, #tpu.memory_space<vmem>>, vector<2x32xf32>
    %cst_10 = arith.constant dense<0.000000e+00> : vector<4x32xf32>
    %11 = tpu.matmul %9, %10, %cst_10 {dimension_numbers = #tpu.dot_dimension_numbers<[1], [0], [0], [1], [0, 0, 1, 1], [], []>} : vector<4x2xf32>, vector<2x32xf32>, vector<4x32xf32> -> vector<4x32xf32>
    %12 = vector.extract_strided_slice %11 {offsets = [0, 0], sizes = [2, 32], strides = [1, 1]} : vector<4x32xf32> to vector<2x32xf32>
    %13 = vector.extract_strided_slice %11 {offsets = [2, 0], sizes = [2, 32], strides = [1, 1]} : vector<4x32xf32> to vector<2x32xf32>
    %14 = arith.addf %12, %13 : vector<2x32xf32>
    %15 = arith.negf %14 : vector<2x32xf32>
    %16 = math.exp %15 : vector<2x32xf32>
    %cst_11 = arith.constant 1.000000e+00 : f32
    %17 = vector.broadcast %cst_11 : f32 to vector<2x32xf32>
    %18 = arith.addf %17, %16 : vector<2x32xf32>
    %19 = arith.divf %17, %18 : vector<2x32xf32>
    %20 = vector.shape_cast %19 : vector<2x32xf32> to vector<2x32x1xf32>
    %21 = vector.broadcast %20 : vector<2x32x1xf32> to vector<2x32x256xf32>
    %22 = arith.mulf %21, %0 : vector<2x32x256xf32>
    %cst_12 = arith.constant 0.000000e+00 : f32
    %23 = vector.broadcast %cst_12 : f32 to vector<2x32x256xf32>
    %24 = arith.maximumf %22, %23 : vector<2x32x256xf32>
    %25 = arith.mulf %0, %24 : vector<2x32x256xf32>
    %cst_13 = arith.constant dense<0.000000e+00> : vector<2x256xf32>
    %26 = vector.multi_reduction <add>, %25, %cst_13 [1] : vector<2x32x256xf32> to vector<2x256xf32>
    %cst_14 = arith.constant 3.200000e+01 : f32
    %27 = vector.broadcast %cst_14 : f32 to vector<2x256xf32>
    %28 = arith.divf %26, %27 : vector<2x256xf32>
    %cst_15 = arith.constant dense<0xFF800000> : vector<2x256xf32>
    %29 = vector.multi_reduction <maximumf>, %25, %cst_15 [1] : vector<2x32x256xf32> to vector<2x256xf32>
    %30 = tpu.concatenate %28, %29 in 1 : vector<2x256xf32>, vector<2x256xf32> -> vector<2x512xf32>
    %c0_16 = arith.constant 0 : index
    %c0_17 = arith.constant 0 : index
    %31 = vector.load %arg4[%c0_16, %c0_17] : memref<512x256xf32, #tpu.memory_space<vmem>>, vector<512x256xf32>
    %cst_18 = arith.constant dense<0.000000e+00> : vector<2x256xf32>
    %32 = tpu.matmul %30, %31, %cst_18 {dimension_numbers = #tpu.dot_dimension_numbers<[1], [0], [0], [1], [0, 0, 1, 1], [], []>} : vector<2x512xf32>, vector<512x256xf32>, vector<2x256xf32> -> vector<2x256xf32>
    %33 = arith.negf %32 : vector<2x256xf32>
    %34 = math.exp %33 : vector<2x256xf32>
    %cst_19 = arith.constant 1.000000e+00 : f32
    %35 = vector.broadcast %cst_19 : f32 to vector<2x256xf32>
    %36 = arith.addf %35, %34 : vector<2x256xf32>
    %37 = arith.divf %35, %36 : vector<2x256xf32>
    %38 = vector.shape_cast %37 : vector<2x256xf32> to vector<2x1x256xf32>
    %39 = vector.broadcast %38 : vector<2x1x256xf32> to vector<2x32x256xf32>
    %40 = arith.mulf %39, %25 : vector<2x32x256xf32>
    %41 = arith.mulf %40, %25 : vector<2x32x256xf32>
    %c0_20 = arith.constant 0 : index
    %c0_21 = arith.constant 0 : index
    %c0_22 = arith.constant 0 : index
    %42 = vector.load %arg5[%c0_20, %c0_21, %c0_22] : memref<2x32x256xf32, #tpu.memory_space<vmem>>, vector<2x32x256xf32>
    tpu.vector_store %arg5[%c0_20, %c0_21, %c0_22], %41 {strides = array<i32>} : memref<2x32x256xf32, #tpu.memory_space<vmem>>, vector<2x32x256xf32>,
    return
  }
  func.func @transform_0(%arg0: i32) -> (i32, i32, i32) {
    %c0_i32 = arith.constant 0 : i32
    %c0_i32_0 = arith.constant 0 : i32
    %c0_i32_1 = arith.constant 0 : i32
    return %arg0, %c0_i32, %c0_i32_0 : i32, i32, i32
  }
  func.func @transform_1(%arg0: i32) -> (i32, i32) {
    %c0_i32 = arith.constant 0 : i32
    %c0_i32_0 = arith.constant 0 : i32
    %c0_i32_1 = arith.constant 0 : i32
    return %c0_i32, %c0_i32_0 : i32, i32
  }
  func.func @transform_2(%arg0: i32) -> (i32, i32) {
    %c0_i32 = arith.constant 0 : i32
    %c0_i32_0 = arith.constant 0 : i32
    %c0_i32_1 = arith.constant 0 : i32
    return %c0_i32, %c0_i32_0 : i32, i32
  }
  func.func @transform_3(%arg0: i32) -> (i32, i32) {
    %c0_i32 = arith.constant 0 : i32
    %c0_i32_0 = arith.constant 0 : i32
    %c0_i32_1 = arith.constant 0 : i32
    return %c0_i32, %c0_i32_0 : i32, i32
  }
  func.func @transform_4(%arg0: i32) -> (i32, i32, i32) {
    %c0_i32 = arith.constant 0 : i32
    %c0_i32_0 = arith.constant 0 : i32
    %c0_i32_1 = arith.constant 0 : i32
    return %arg0, %c0_i32, %c0_i32_0 : i32, i32, i32
  }
}

</mosaic_0001>

<bundles_post_ra>
// kernel: tpu_custom_call.1
= control target key start
LH: loop header
LB: loop body
LE: loop exit
PB: predicated region body
PF: predicated region fallthrough
CT: control target
= control target key end

     0   :  { %9 = vsyncpa [#allocation3], 0  ;;  %s1552_s0 = inlined_call_operand.hbm [shape: f32[2,32,256], index: 0, kind: input, shape index: {}]   ;;  %s1553_s1 = inlined_call_operand.vmem [shape: f32[32,2], index: 1, kind: input, shape index: {}]   ;;  %s1554_s2 = inlined_call_operand.vmem [shape: f32[2,32], index: 2, kind: input, shape index: {}]   ;;  %s1555_s3 = inlined_call_operand.hbm [shape: f32[512,256], index: 3, kind: input, shape index: {}]   ;;  %s1556_s4 = inlined_call_operand.hbm [shape: f32[2,32,256], index: 4, kind: output, shape index: {}]  }
   0x1   :  { %10 = vsyncpa [#allocation6], 0 }
   0x2   :  { %11 = vsyncpa [#allocation4], 0  ;;  %s1223_s15 = smov [#allocation2]   ;;  %s1151_s19 = scalar_lea.hbm %s1552_s0, 2048 }
   0x3   :  { %s17_s16 = sshll.u32 %s1223_s15, 4  ;;  %p1152_p0 = scmp.ne.s32.totalorder %s1552_s0, %s1151_s19  ;;  %s18_s16 = int_to_ptr.vmem [resolvable:$true] %s17_s16 }
   0x4   :  { %p1155_p1 = scmp.lt.u32.totalorder %s1151_s19, %s1552_s0 }
   0x6   :  { %p1157_p2 = pnand %p1155_p1, %p1152_p0 }
   0x8   :  { %1160 = shalt.err (!%p1157_p2)
}
   0x9   :  { %s1161_s24 = scalar_lea.vmem %s18_s16, 2048  ;;  %p1166_p4 = scmp.lt.s32.totalorder %s18_s16, %s18_s16 }
   0xa   :  { %p1162_p3 = scmp.ne.s32.totalorder %s18_s16, %s1161_s24  ;;  %p1167_p5 = scmp.lt.s32.totalorder %s1161_s24, %s1161_s24 }
   0xc   :  { %p1168_p6 = por %p1167_p5, %p1166_p4 }
   0xe   :  { %p1169_p7 = pnand %p1168_p6, %p1162_p3 }
  0x10   :  { %1172 = shalt.err (!%p1169_p7)
}
  0x11   :  { %s1224_s25 = smov 256   ;;  %s1225_s26 = smov 16  }
  0x12   :  { %23 = dma.hbm_to_vmem [thread:$0]  %s1552_s0, 2048, %s18_s16, [#allocation3], %s1224_s25, %s1224_s25, %s1225_s26  }
  0x13   :  { %s1226_s29 = smov [#allocation5]   ;;  %s1173_s7 = scalar_lea.hbm %s1555_s3, 16384 }
  0x14   :  { %s33_s30 = sshll.u32 %s1226_s29, 4  ;;  %p1174_p8 = scmp.ne.s32.totalorder %s1555_s3, %s1173_s7  ;;  %s34_s30 = int_to_ptr.vmem [resolvable:$true] %s33_s30 }
  0x15   :  { %p1177_p9 = scmp.lt.u32.totalorder %s1173_s7, %s1555_s3 }
  0x17   :  { %p1179_p10 = pnand %p1177_p9, %p1174_p8 }
  0x19   :  { %1182 = shalt.err (!%p1179_p10)
}
  0x1a   :  { %s1183_s12 = scalar_lea.vmem %s34_s30, 16384  ;;  %p1188_p12 = scmp.lt.s32.totalorder %s34_s30, %s34_s30 }
  0x1b   :  { %p1184_p11 = scmp.ne.s32.totalorder %s34_s30, %s1183_s12  ;;  %p1189_p13 = scmp.lt.s32.totalorder %s1183_s12, %s1183_s12 }
  0x1d   :  { %p1190_p0 = por %p1189_p13, %p1188_p12 }
  0x1f   :  { %p1191_p1 = pnand %p1190_p0, %p1184_p11 }
  0x21   :  { %1194 = shalt.err (!%p1191_p1)
}
  0x22   :  { %39 = dma.hbm_to_vmem [thread:$0]  %s1555_s3, 16384, %s34_s30, [#allocation6], %s1224_s25, %s1224_s25, %s1225_s26  }
  0x23   :  { %1217 = dma.done.wait [#allocation3], 2048  }
  0x24   :  { %1218 = vsyncadd [#allocation3], 4294965248 }
  0x25   :  { %1219 = dma.done.wait [#allocation6], 16384  }
  0x26   :  { %1220 = vsyncadd [#allocation6], 4294950912  ;;  %v1287_v0 = vld [vmem:[#allocation2 + $0x40] sm:$0xff]  ;;  %v1289_v1 = vld [vmem:[#allocation2 + $0x48] sm:$0xff]  ;;  %v1227_v35 = vmov 0.0|0.0   ;;  %vm1228_vm0 = vmmov 0   ;;  %v126_v45 = vlaneseq }
  0x27   :  { %v1291_v2 = vld [vmem:[#allocation2] sm:$0xff]  ;;  %v74_v3 = vadd.f32 %v1289_v1, %v1287_v0  ;;  %v1295_v4 = vld [vmem:[#allocation2 + $0x8] sm:$0xff]  ;;  %v1297_v5 = vld [vmem:[#allocation2 + $0x50] sm:$0xff]  ;;  %v106_v27 = vmax.f32 %v1287_v0, %v1289_v1  ;;  %994 = vmatprep.subr.bf16.mxu0 %v1227_v35  ;;  %v1229_v39 = vmov 0.0   ;;  %vm137_vm1 = vcmask 130112  }
  0x28   :  { %v1299_v6 = vld [vmem:[#allocation2 + $0x58] sm:$0xff]  ;;  %v62_v7 = vadd.f32 %v1295_v4, %v1291_v2  ;;  %v1303_v8 = vld [vmem:[#allocation2 + $0x10] sm:$0xff]  ;;  %v1311_v12 = vld [vmem:[#allocation2 + $0x60] sm:$0xff]  ;;  %v94_v25 = vmax.f32 %v1291_v2, %v1295_v4  ;;  %986 = vmatprep.mubr.msk.f32.mxu0 %vm1228_vm0, %v1229_v39  ;;  %989 = vmatprep.subr.mxu1 %v1229_v39  ;;  %v127_v48 = vand.u32 127, %v126_v45  ;;  %v1363_v50 = vshrl.u32 %v126_v45, 7 }
  0x29   :  { %v1305_v9 = vld [vmem:[#allocation2 + $0x18] sm:$0xff]  ;;  %75 = vadd.xlane.f32.xlu1 %v74_v3  ;;  %v77_v10 = vadd.f32 %v1299_v6, %v1297_v5  ;;  %v1313_v13 = vld [vmem:[#allocation2 + $0x68] sm:$0xff]  ;;  %v1315_v14 = vld [vmem:[#allocation2 + $0x20] sm:$0xff]  ;;  %v109_v26 = vmax.f32 %v1297_v5, %v1299_v6  ;;  %991 = vmatprep.mubr.msk.f32.mxu1 %vm1228_vm0, %v1229_v39  ;;  %vm144_vm2 = vcmask 195712   ;;  %vm151_vm3 = vcmask 261312  }
  0x2a   :  { %63 = vadd.xlane.f32.xlu0 %v62_v7  ;;  %v65_v11 = vadd.f32 %v1305_v9, %v1303_v8  ;;  %v1317_v15 = vld [vmem:[#allocation2 + $0x28] sm:$0xff]  ;;  %v80_v16 = vadd.f32 %v1313_v13, %v1311_v12  ;;  %v1323_v18 = vld [vmem:[#allocation2 + $0x70] sm:$0xff]  ;;  %v1325_v19 = vld [vmem:[#allocation2 + $0x78] sm:$0xff]  ;;  %v97_v24 = vmax.f32 %v1303_v8, %v1305_v9  ;;  %v112_v28 = vmax.f32 %v1311_v12, %v1313_v13 }
  0x2b   :  { %v68_v17 = vadd.f32 %v1317_v15, %v1315_v14  ;;  %v1327_v20 = vld [vmem:[#allocation2 + $0x30] sm:$0xff]  ;;  %v1329_v21 = vld [vmem:[#allocation2 + $0x38] sm:$0xff]  ;;  %v83_v22 = vadd.f32 %v1325_v19, %v1323_v18  ;;  %v100_v29 = vmax.f32 %v1315_v14, %v1317_v15  ;;  %v115_v30 = vmax.f32 %v1323_v18, %v1325_v19  ;;  %v226_v32 = vld [vmem:[%s1553_s1] sm:$0xff] }
  0x2c   :  { %v71_v23 = vadd.f32 %v1329_v21, %v1327_v20  ;;  %v103_v31 = vmax.f32 %v1327_v20, %v1329_v21  ;;  %v227_v33 = vld [vmem:[%s1553_s1 + $0x8] sm:$0xff]  ;;  %v228_v36 = vld [vmem:[%s1553_s1 + $0x10] sm:$0xff]  ;;  %v229_v37 = vld [vmem:[%s1553_s1 + $0x18] sm:$0xff]  ;;  %v132_v51 = vadd.s32 4294967288, %v127_v48  ;;  %v139_v52 = vadd.s32 4294967280, %v127_v48 }
  0x2d   :  { %78 = vadd.xlane.f32.xlu1 %v77_v10  ;;  %v995_v34 = vpack.c.bf16 %v227_v33, %v226_v32  ;;  %v998_v38 = vpack.c.bf16 %v229_v37, %v228_v36  ;;  %v146_v54 = vadd.s32 4294967272, %v127_v48  ;;  %v130_v56 = vsub.s32 %v127_v48, %v1363_v50 }
  0x2e   :  { %66 = vadd.xlane.f32.xlu0 %v65_v11  ;;  %v135_v57 = vsub.s32 %v132_v51, %v1363_v50  ;;  %v142_v59 = vsub.s32 %v139_v52, %v1363_v50  ;;  %vm172_vm4 = vcmask 1041409   ;;  %vm221_vm5 = vcmask 1043459  }
  0x2f   :  { %996 = vmatpush3.bf16.msra.mxu0 %v995_v34  ;;  %v149_v10 = vsub.s32 %v146_v54, %v1363_v50  ;;  %vm224_vm6 = vcmask 1041408   ;;  %vm230_vm7 = vcmask 261120   ;;  %vm306_vm8 = vcmask 15360  }
  0x30   :  { %997 = vmatprep.subr.bf16.mxu0 %v1227_v35 }
  0x31   :  { %81 = vadd.xlane.f32.xlu1 %v80_v16 }
  0x32   :  { %69 = vadd.xlane.f32.xlu0 %v68_v17 }
  0x33   :  { %999 = vmatpush3.bf16.msra.mxu0 %v998_v38 }
  0x35   :  { %84 = vadd.xlane.f32.xlu1 %v83_v22 }
  0x36   :  { %72 = vadd.xlane.f32.xlu0 %v71_v23 }
  0x39   :  { %98 = vmax.xlane.f32.xlu1 %v97_v24 }
  0x3a   :  { %95 = vmax.xlane.f32.xlu0 %v94_v25 }
  0x3d   :  { %110 = vmax.xlane.f32.xlu1 %v109_v26 }
  0x3e   :  { %107 = vmax.xlane.f32.xlu0 %v106_v27 }
  0x41   :  { %113 = vmax.xlane.f32.xlu1 %v112_v28 }
  0x42   :  { %101 = vmax.xlane.f32.xlu0 %v100_v29 }
  0x45   :  { %116 = vmax.xlane.f32.xlu1 %v115_v30 }
  0x46   :  { %104 = vmax.xlane.f32.xlu0 %v103_v31 }
  0xb6   :  { %v76_v40 = vpop.xlane.xlu1 %75 }
  0xb7   :  { %v64_v41 = vpop.xlane.xlu0 %63  ;;  %v90_v60 = vmul.f32 0.00390625, %v76_v40 }
  0xb8   :  { %v86_v61 = vmul.f32 0.00390625, %v64_v41 }
  0xb9   :  { %v156_v23 = vrot.slane %v90_v60, %v130_v56 }
  0xba   :  { %v79_v42 = vpop.xlane.xlu1 %78  ;;  %v131_v24 = vrot.slane %v86_v61, %v130_v56 }
  0xbb   :  { %v67_v43 = vpop.xlane.xlu0 %66  ;;  %v91_v58 = vmul.f32 0.00390625, %v79_v42 }
  0xbc   :  { %v87_v62 = vmul.f32 0.00390625, %v67_v43 }
  0xbd   :  { %v160_v22 = vrot.slane %v91_v58, %v135_v57  ;;  %v305_v58 = vld [vmem:[%s1554_s2] sm:$0x3]  ;;  %s1231_s2 = smov [#allocation7]  }
  0xbe   :  { %v82_v44 = vpop.xlane.xlu1 %81  ;;  %v136_v25 = vrot.slane %v87_v62, %v135_v57  ;;  %990 = vmatpush3.msk.msra.mxu1 %vm224_vm6, %v305_v58  ;;  %v637_v62 = vld [vmem:[#allocation5 + $0x208] sm:$0xff]  ;;  %s952_s22 = sshll.u32 %s1231_s2, 4  ;;  %s953_s22 = int_to_ptr.vmem [resolvable:$true] %s952_s22 }
  0xbf   :  { %v70_v46 = vpop.xlane.xlu0 %69  ;;  %v92_v63 = vmul.f32 0.00390625, %v82_v44  ;;  %v161_v37 = vsel %vm137_vm1, %v160_v22, %v156_v23  ;;  %v572_v23 = vld [vmem:[#allocation5] sm:$0xff]  ;;  %s1195_s23 = scalar_lea.vmem %s953_s22, 2048  ;;  %p1200_p3 = scmp.lt.s32.totalorder %s953_s22, %s953_s22 }
  0xc0   :  { %v88_v7 = vmul.f32 0.00390625, %v70_v46  ;;  %v138_v39 = vsel %vm137_vm1, %v136_v25, %v131_v24  ;;  %v574_v24 = vld [vmem:[#allocation5 + $0x10] sm:$0xff]  ;;  %v641_v25 = vld [vmem:[#allocation5 + $0x228] sm:$0xff]  ;;  %p1196_p2 = scmp.ne.s32.totalorder %s953_s22, %s1195_s23  ;;  %p1201_p4 = scmp.lt.s32.totalorder %s1195_s23, %s1195_s23 }
  0xc1   :  { %v165_v26 = vrot.slane %v92_v63, %v142_v59  ;;  %v639_v63 = vld [vmem:[#allocation5 + $0x218] sm:$0xff] }
  0xc2   :  { %v85_v47 = vpop.xlane.xlu1 %84  ;;  %v143_v28 = vrot.slane %v88_v7, %v142_v59  ;;  %v1064_v7 = vpack.c.bf16 %v639_v63, %v637_v62  ;;  %v655_v62 = vld [vmem:[#allocation5 + $0x298] sm:$0xff]  ;;  %p1202_p5 = por %p1201_p4, %p1200_p3 }
  0xc3   :  { %v73_v49 = vpop.xlane.xlu0 %72  ;;  %v93_v11 = vmul.f32 0.00390625, %v85_v47  ;;  %v166_v40 = vsel %vm144_vm2, %v165_v26, %v161_v37  ;;  %v1002_v26 = vpack.c.bf16 %v574_v24, %v572_v23  ;;  %v645_v37 = vld [vmem:[#allocation5 + $0x248] sm:$0xff]  ;;  %v590_v24 = vld [vmem:[#allocation5 + $0x90] sm:$0xff] }
  0xc4   :  { %v89_v17 = vmul.f32 0.00390625, %v73_v49  ;;  %v145_v42 = vsel %vm144_vm2, %v143_v28, %v138_v39  ;;  %1065 = vmatprep.subr.bf16.mxu1 %v1064_v7  ;;  %v640_v28 = vld [vmem:[#allocation5 + $0x220] sm:$0xff]  ;;  %v591_v7 = vld [vmem:[#allocation5 + $0x98] sm:$0xff]  ;;  %p1203_p6 = pnand %p1202_p5, %p1196_p2 }
  0xc5   :  { %v170_v29 = vrot.slane %v93_v11, %v149_v10  ;;  %v573_v11 = vld [vmem:[#allocation5 + $0x8] sm:$0xff] }
  0xc6   :  { %v99_v53 = vpop.xlane.xlu1 %98  ;;  %v150_v33 = vrot.slane %v89_v17, %v149_v10 }
  0xc7   :  { %v96_v55 = vpop.xlane.xlu0 %95  ;;  %v190_v34 = vrot.slane %v99_v53, %v135_v57  ;;  %v171_v43 = vsel %vm151_vm3, %v170_v29, %v166_v40  ;;  %v642_v29 = vld [vmem:[#allocation5 + $0x230] sm:$0xff] }
  0xc8   :  { %v186_v35 = vrot.slane %v96_v55, %v130_v56  ;;  %v152_v47 = vsel %vm151_vm3, %v150_v33, %v145_v42  ;;  %v579_v33 = vld [vmem:[#allocation5 + $0x38] sm:$0xff]  ;;  %v646_v42 = vld [vmem:[#allocation5 + $0x250] sm:$0xff] }
  0xc9   :  { %v173_v55 = vsel %vm172_vm4, %v171_v43, %v152_v47  ;;  %v581_v43 = vld [vmem:[#allocation5 + $0x48] sm:$0xff] }
  0xca   :  { %v111_v3 = vpop.xlane.xlu1 %110  ;;  %v191_v48 = vsel %vm137_vm1, %v190_v34, %v186_v35  ;;  %v576_v34 = vld [vmem:[#allocation5 + $0x20] sm:$0xff] }
  0xcb   :  { %v108_v16 = vpop.xlane.xlu0 %107  ;;  %v209_v30 = vrot.slane %v111_v3, %v135_v57  ;;  %v636_v3 = vld [vmem:[#allocation5 + $0x200] sm:$0xff] }
  0xcc   :  { %v205_v31 = vrot.slane %v108_v16, %v130_v56  ;;  %v575_v16 = vld [vmem:[#allocation5 + $0x18] sm:$0xff] }
  0xcd   :  { %v1000_v22 = vpack.c.bf16 %v575_v16, %v573_v11  ;;  %v652_v16 = vld [vmem:[#allocation5 + $0x280] sm:$0xff] }
  0xce   :  { %v114_v27 = vpop.xlane.xlu1 %113  ;;  %v210_v44 = vsel %vm137_vm1, %v209_v30, %v205_v31  ;;  %v1070_v31 = vpack.c.bf16 %v642_v29, %v640_v28  ;;  %v595_v28 = vld [vmem:[#allocation5 + $0xb8] sm:$0xff] }
  0xcf   :  { %v102_v32 = vpop.xlane.xlu0 %101  ;;  %v214_v36 = vrot.slane %v114_v27, %v142_v59  ;;  %v643_v27 = vld [vmem:[#allocation5 + $0x238] sm:$0xff]  ;;  %1001 = vmatprep.subr.bf16.mxu0 %v1000_v22  ;;  %v588_v22 = vld [vmem:[#allocation5 + $0x80] sm:$0xff] }
  0xd0   :  { %v195_v38 = vrot.slane %v102_v32, %v142_v59  ;;  %v1068_v30 = vpack.c.bf16 %v643_v27, %v641_v25  ;;  %v577_v32 = vld [vmem:[#allocation5 + $0x28] sm:$0xff] }
  0xd1   :  { %v215_v49 = vsel %vm144_vm2, %v214_v36, %v210_v44  ;;  %v1004_v35 = vpack.c.bf16 %v579_v33, %v577_v32  ;;  %v578_v36 = vld [vmem:[#allocation5 + $0x30] sm:$0xff]  ;;  %v583_v44 = vld [vmem:[#allocation5 + $0x58] sm:$0xff]  ;;  %v657_v25 = vld [vmem:[#allocation5 + $0x2a8] sm:$0xff] }
  0xd2   :  { %v117_v41 = vpop.xlane.xlu1 %116  ;;  %v196_v52 = vsel %vm144_vm2, %v195_v38, %v191_v48  ;;  %v647_v38 = vld [vmem:[#allocation5 + $0x258] sm:$0xff]  ;;  %v1006_v39 = vpack.c.bf16 %v578_v36, %v576_v34  ;;  %v1008_v48 = vpack.c.bf16 %v583_v44, %v581_v43  ;;  %v593_v27 = vld [vmem:[#allocation5 + $0xa8] sm:$0xff]  ;;  %v656_v32 = vld [vmem:[#allocation5 + $0x2a0] sm:$0xff] }
  0xd3   :  { %v219_v45 = vrot.slane %v117_v41, %v149_v10  ;;  %v105_v46 = vpop.xlane.xlu0 %104  ;;  %v1072_v40 = vpack.c.bf16 %v647_v38, %v645_v37  ;;  %v644_v41 = vld [vmem:[#allocation5 + $0x240] sm:$0xff]  ;;  %v658_v33 = vld [vmem:[#allocation5 + $0x2b0] sm:$0xff]  ;;  %v661_v37 = vld [vmem:[#allocation5 + $0x2c8] sm:$0xff] }
  0xd4   :  { %v200_v51 = vrot.slane %v105_v46, %v149_v10  ;;  %v638_v10 = vld [vmem:[#allocation5 + $0x210] sm:$0xff]  ;;  %v1074_v47 = vpack.c.bf16 %v646_v42, %v644_v41  ;;  %v592_v34 = vld [vmem:[#allocation5 + $0xa0] sm:$0xff]  ;;  %v663_v38 = vld [vmem:[#allocation5 + $0x2d8] sm:$0xff] }
  0xd5   :  { %v220_v53 = vsel %vm151_vm3, %v219_v45, %v215_v49  ;;  %v1066_v17 = vpack.c.bf16 %v638_v10, %v636_v3  ;;  %v580_v45 = vld [vmem:[#allocation5 + $0x40] sm:$0xff]  ;;  %v582_v46 = vld [vmem:[#allocation5 + $0x50] sm:$0xff]  ;;  %v649_v49 = vld [vmem:[#allocation5 + $0x268] sm:$0xff]  ;;  %v1088_v41 = vpack.c.bf16 %v663_v38, %v661_v37 }
  0xd6   :  { %v201_v54 = vsel %vm151_vm3, %v200_v51, %v196_v52  ;;  %v651_v51 = vld [vmem:[#allocation5 + $0x278] sm:$0xff]  ;;  %v648_v52 = vld [vmem:[#allocation5 + $0x260] sm:$0xff]  ;;  %v589_v3 = vld [vmem:[#allocation5 + $0x88] sm:$0xff] }
  0xd7   :  { %v222_v56 = vsel %vm221_vm5, %v220_v53, %v201_v54  ;;  %v1010_v53 = vpack.c.bf16 %v582_v46, %v580_v45  ;;  %v1076_v54 = vpack.c.bf16 %v651_v51, %v649_v49  ;;  %v1016_v23 = vpack.c.bf16 %v591_v7, %v589_v3  ;;  %v594_v36 = vld [vmem:[#allocation5 + $0xb0] sm:$0xff]  ;;  %v660_v42 = vld [vmem:[#allocation5 + $0x2c0] sm:$0xff]  ;;  %v601_v7 = vld [vmem:[#allocation5 + $0xe8] sm:$0xff] }
  0xd8   :  { %v225_v57 = vsel %vm224_vm6, %v173_v55, %v222_v56  ;;  %v650_v55 = vld [vmem:[#allocation5 + $0x270] sm:$0xff]  ;;  %v585_v56 = vld [vmem:[#allocation5 + $0x68] sm:$0xff]  ;;  %v675_v37 = vld [vmem:[#allocation5 + $0x338] sm:$0xff] }
  0xd9   :  { %987 = vmatmul.mubr.msk.f32.vlgmr.msra.gmra.mrb[0].mxu0 %vm230_vm7, %v225_v57  ;;  %v587_v57 = vld [vmem:[#allocation5 + $0x78] sm:$0xff]  ;;  %v1078_v63 = vpack.c.bf16 %v650_v55, %v648_v52  ;;  %v662_v43 = vld [vmem:[#allocation5 + $0x2d0] sm:$0xff]  ;;  %v597_v52 = vld [vmem:[#allocation5 + $0xc8] sm:$0xff] }
  0xda   :  { %1003 = vmatpush1.bf16.msra.mxu0 %v1002_v26  ;;  %v1012_v58 = vpack.c.bf16 %v587_v57, %v585_v56  ;;  %v659_v26 = vld [vmem:[#allocation5 + $0x2b8] sm:$0xff]  ;;  %v1090_v44 = vpack.c.bf16 %v662_v43, %v660_v42  ;;  %v596_v56 = vld [vmem:[#allocation5 + $0xc0] sm:$0xff]  ;;  %v598_v57 = vld [vmem:[#allocation5 + $0xd0] sm:$0xff] }
  0xdb   :  { %1005 = vmatprep.subr.bf16.mxu0 %v1004_v35  ;;  %v1020_v35 = vpack.c.bf16 %v595_v28, %v593_v27  ;;  %v670_v27 = vld [vmem:[#allocation5 + $0x310] sm:$0xff] }
  0xde   :  { %1007 = vmatpush1.bf16.msra.mxu0 %v1006_v39  ;;  %v1086_v39 = vpack.c.bf16 %v658_v33, %v656_v32  ;;  %v604_v33 = vld [vmem:[#allocation5 + $0x100] sm:$0xff] }
  0xdf   :  { %1009 = vmatprep.subr.bf16.mxu0 %v1008_v48 }
  0xe2   :  { %1011 = vmatpush1.bf16.msra.mxu0 %v1010_v53  ;;  %v599_v53 = vld [vmem:[#allocation5 + $0xd8] sm:$0xff] }
  0xe3   :  { %1013 = vmatprep.subr.bf16.mxu0 %v1012_v58  ;;  %v1024_v55 = vpack.c.bf16 %v599_v53, %v597_v52  ;;  %v1026_v58 = vpack.c.bf16 %v598_v57, %v596_v56  ;;  %v677_v52 = vld [vmem:[#allocation5 + $0x348] sm:$0xff]  ;;  %v679_v53 = vld [vmem:[#allocation5 + $0x358] sm:$0xff]  ;;  %v678_v56 = vld [vmem:[#allocation5 + $0x350] sm:$0xff] }
 0x1ac   :  { %v300_v59 = vpop.f32.mrb[0].mxu0 }
 0x1ad   :  { %v304_v60 = vmax.f32 %v300_v59, 0.0  ;;  %v988_v61 = vpop.f32.mrb[1].mxu0  ;;  %v584_v59 = vld [vmem:[#allocation5 + $0x60] sm:$0xff] }
 0x1ae   :  { %v653_v61 = vld [vmem:[#allocation5 + $0x288] sm:$0xff] }
 0x1af   :  { %992 = vmatmul.mubr.msk.f32.vlgmr.msra.gmra.mrb[0].mxu1 %vm306_vm8, %v304_v60  ;;  %v586_v60 = vld [vmem:[#allocation5 + $0x70] sm:$0xff]  ;;  %v1080_v11 = vpack.c.bf16 %v655_v62, %v653_v61  ;;  %v664_v62 = vld [vmem:[#allocation5 + $0x2e0] sm:$0xff] }
 0x1b0   :  { %1067 = vmatpush1.bf16.msra.mxu1 %v1066_v17  ;;  %v1014_v10 = vpack.c.bf16 %v586_v60, %v584_v59  ;;  %v654_v17 = vld [vmem:[#allocation5 + $0x290] sm:$0xff]  ;;  %v665_v59 = vld [vmem:[#allocation5 + $0x2e8] sm:$0xff]  ;;  %v667_v60 = vld [vmem:[#allocation5 + $0x2f8] sm:$0xff] }
 0x1b1   :  { %1069 = vmatprep.subr.bf16.mxu1 %v1068_v30  ;;  %v1082_v29 = vpack.c.bf16 %v654_v17, %v652_v16  ;;  %v1018_v30 = vpack.c.bf16 %v590_v24, %v588_v22  ;;  %v1092_v61 = vpack.c.bf16 %v667_v60, %v665_v59  ;;  %v600_v16 = vld [vmem:[#allocation5 + $0xe0] sm:$0xff]  ;;  %v602_v17 = vld [vmem:[#allocation5 + $0xf0] sm:$0xff]  ;;  %v671_v24 = vld [vmem:[#allocation5 + $0x318] sm:$0xff] }
 0x1b2   :  { %1015 = vmatpush1.bf16.msra.mxu0 %v1014_v10  ;;  %v603_v10 = vld [vmem:[#allocation5 + $0xf8] sm:$0xff]  ;;  %v1030_v22 = vpack.c.bf16 %v602_v17, %v600_v16  ;;  %v613_v59 = vld [vmem:[#allocation5 + $0x148] sm:$0xff]  ;;  %v680_v16 = vld [vmem:[#allocation5 + $0x360] sm:$0xff] }
 0x1b3   :  { %1017 = vmatprep.subr.bf16.mxu0 %v1016_v23  ;;  %v669_v23 = vld [vmem:[#allocation5 + $0x308] sm:$0xff]  ;;  %v615_v60 = vld [vmem:[#allocation5 + $0x158] sm:$0xff]  ;;  %v682_v17 = vld [vmem:[#allocation5 + $0x370] sm:$0xff] }
 0x1b4   :  { %1071 = vmatpush1.bf16.msra.mxu1 %v1070_v31  ;;  %v1084_v31 = vpack.c.bf16 %v659_v26, %v657_v25  ;;  %v1096_v25 = vpack.c.bf16 %v671_v24, %v669_v23  ;;  %v668_v26 = vld [vmem:[#allocation5 + $0x300] sm:$0xff]  ;;  %v617_v23 = vld [vmem:[#allocation5 + $0x168] sm:$0xff]  ;;  %v619_v24 = vld [vmem:[#allocation5 + $0x178] sm:$0xff] }
 0x1b5   :  { %1073 = vmatprep.subr.bf16.mxu1 %v1072_v40  ;;  %v1022_v40 = vpack.c.bf16 %v594_v36, %v592_v34  ;;  %v1098_v28 = vpack.c.bf16 %v670_v27, %v668_v26  ;;  %v606_v34 = vld [vmem:[#allocation5 + $0x110] sm:$0xff]  ;;  %v673_v36 = vld [vmem:[#allocation5 + $0x328] sm:$0xff]  ;;  %v616_v26 = vld [vmem:[#allocation5 + $0x160] sm:$0xff] }
 0x1b6   :  { %1019 = vmatpush1.bf16.msra.mxu0 %v1018_v30  ;;  %v607_v30 = vld [vmem:[#allocation5 + $0x118] sm:$0xff]  ;;  %v1100_v38 = vpack.c.bf16 %v675_v37, %v673_v36  ;;  %v618_v27 = vld [vmem:[#allocation5 + $0x170] sm:$0xff]  ;;  %v621_v36 = vld [vmem:[#allocation5 + $0x188] sm:$0xff] }
 0x1b7   :  { %1021 = vmatprep.subr.bf16.mxu0 %v1020_v35  ;;  %v1034_v35 = vpack.c.bf16 %v606_v34, %v604_v33  ;;  %v684_v33 = vld [vmem:[#allocation5 + $0x380] sm:$0xff]  ;;  %v686_v34 = vld [vmem:[#allocation5 + $0x390] sm:$0xff]  ;;  %v623_v37 = vld [vmem:[#allocation5 + $0x198] sm:$0xff] }
 0x1b8   :  { %1075 = vmatpush1.bf16.msra.mxu1 %v1074_v47 }
 0x1b9   :  { %1077 = vmatprep.subr.bf16.mxu1 %v1076_v54 }
 0x1ba   :  { %1023 = vmatpush1.bf16.msra.mxu0 %v1022_v40  ;;  %v674_v40 = vld [vmem:[#allocation5 + $0x330] sm:$0xff] }
 0x1bb   :  { %1025 = vmatprep.subr.bf16.mxu0 %v1024_v55  ;;  %v676_v55 = vld [vmem:[#allocation5 + $0x340] sm:$0xff] }
 0x1bc   :  { %1079 = vmatpush1.bf16.msra.mxu1 %v1078_v63  ;;  %v666_v63 = vld [vmem:[#allocation5 + $0x2f0] sm:$0xff] }
 0x1bd   :  { %1081 = vmatprep.subr.bf16.mxu1 %v1080_v11  ;;  %v1094_v3 = vpack.c.bf16 %v666_v63, %v664_v62  ;;  %v1028_v11 = vpack.c.bf16 %v603_v10, %v601_v7  ;;  %v612_v62 = vld [vmem:[#allocation5 + $0x140] sm:$0xff]  ;;  %v614_v63 = vld [vmem:[#allocation5 + $0x150] sm:$0xff]  ;;  %v681_v7 = vld [vmem:[#allocation5 + $0x368] sm:$0xff] }
 0x1be   :  { %1027 = vmatpush1.bf16.msra.mxu0 %v1026_v58  ;;  %v1106_v58 = vpack.c.bf16 %v678_v56, %v676_v55  ;;  %v683_v10 = vld [vmem:[#allocation5 + $0x378] sm:$0xff]  ;;  %v693_v55 = vld [vmem:[#allocation5 + $0x3c8] sm:$0xff] }
 0x1bf   :  { %1029 = vmatprep.subr.bf16.mxu0 %v1028_v11  ;;  %v1108_v11 = vpack.c.bf16 %v683_v10, %v681_v7 }
 0x1c0   :  { %1083 = vmatpush1.bf16.msra.mxu1 %v1082_v29  ;;  %v605_v29 = vld [vmem:[#allocation5 + $0x108] sm:$0xff] }
 0x1c1   :  { %1085 = vmatprep.subr.bf16.mxu1 %v1084_v31  ;;  %v1387_v31 = vsub.s32 0, %v1363_v50  ;;  %v1032_v32 = vpack.c.bf16 %v607_v30, %v605_v29  ;;  %v685_v29 = vld [vmem:[#allocation5 + $0x388] sm:$0xff]  ;;  %v687_v30 = vld [vmem:[#allocation5 + $0x398] sm:$0xff] }
 0x1c2   :  { %1031 = vmatpush1.bf16.msra.mxu0 %v1030_v22  ;;  %v1110_v22 = vpack.c.bf16 %v682_v17, %v680_v16  ;;  %v697_v16 = vld [vmem:[#allocation5 + $0x3e8] sm:$0xff]  ;;  %v699_v17 = vld [vmem:[#allocation5 + $0x3f8] sm:$0xff] }
 0x1c3   :  { %1033 = vmatprep.subr.bf16.mxu0 %v1032_v32  ;;  %v1112_v32 = vpack.c.bf16 %v687_v30, %v685_v29 }
 0x1c4   :  { %1087 = vmatpush1.bf16.msra.mxu1 %v1086_v39  ;;  %v672_v39 = vld [vmem:[#allocation5 + $0x320] sm:$0xff] }
 0x1c5   :  { %1089 = vmatprep.subr.bf16.mxu1 %v1088_v41  ;;  %v1102_v42 = vpack.c.bf16 %v674_v40, %v672_v39  ;;  %v620_v39 = vld [vmem:[#allocation5 + $0x180] sm:$0xff]  ;;  %v622_v40 = vld [vmem:[#allocation5 + $0x190] sm:$0xff] }
 0x1c6   :  { %1035 = vmatpush1.bf16.msra.mxu0 %v1034_v35  ;;  %v1114_v35 = vpack.c.bf16 %v686_v34, %v684_v33 }
 0x1c8   :  { %1091 = vmatpush1.bf16.msra.mxu1 %v1090_v44  ;;  %v1391_v44 = vsub.s32 1, %v1363_v50 }
 0x1c9   :  { %1093 = vmatprep.subr.bf16.mxu1 %v1092_v61  ;;  %v1040_v61 = vpack.c.bf16 %v615_v60, %v613_v59  ;;  %v692_v59 = vld [vmem:[#allocation5 + $0x3c0] sm:$0xff]  ;;  %v694_v60 = vld [vmem:[#allocation5 + $0x3d0] sm:$0xff] }
 0x1ca   :  { %v1122_v7 = vpack.c.bf16 %v694_v60, %v692_v59 }
 0x1cc   :  { %1095 = vmatpush1.bf16.msra.mxu1 %v1094_v3  ;;  %v1042_v3 = vpack.c.bf16 %v614_v63, %v612_v62  ;;  %v629_v62 = vld [vmem:[#allocation5 + $0x1c8] sm:$0xff]  ;;  %v631_v63 = vld [vmem:[#allocation5 + $0x1d8] sm:$0xff] }
 0x1cd   :  { %1097 = vmatprep.subr.bf16.mxu1 %v1096_v25  ;;  %v1044_v25 = vpack.c.bf16 %v619_v24, %v617_v23  ;;  %v1056_v10 = vpack.c.bf16 %v631_v63, %v629_v62  ;;  %v1124_v23 = vpack.c.bf16 %v699_v17, %v697_v16  ;;  %v696_v24 = vld [vmem:[#allocation5 + $0x3e0] sm:$0xff] }
 0x1d0   :  { %1099 = vmatpush1.bf16.msra.mxu1 %v1098_v28  ;;  %v1046_v28 = vpack.c.bf16 %v618_v27, %v616_v26  ;;  %v633_v26 = vld [vmem:[#allocation5 + $0x1e8] sm:$0xff]  ;;  %v632_v27 = vld [vmem:[#allocation5 + $0x1e0] sm:$0xff] }
 0x1d1   :  { %1101 = vmatprep.subr.bf16.mxu1 %v1100_v38  ;;  %v1048_v38 = vpack.c.bf16 %v623_v37, %v621_v36 }
 0x1d4   :  { %1103 = vmatpush1.bf16.msra.mxu1 %v1102_v42  ;;  %v689_v42 = vld [vmem:[#allocation5 + $0x3a8] sm:$0xff] }
 0x282   :  { %v379_v45 = vpop.f32.mrb[0].mxu1 }
 0x283   :  { %v384_v46 = vrot.slane %v379_v45, 2  ;;  %v993_v47 = vpop.f32.mrb[1].mxu1 }
 0x285   :  { %v386_v48 = vadd.f32 %v384_v46, %v379_v45  ;;  %v609_v45 = vld [vmem:[#allocation5 + $0x128] sm:$0xff]  ;;  %v611_v46 = vld [vmem:[#allocation5 + $0x138] sm:$0xff] }
 0x286   :  { %v1036_v47 = vpack.c.bf16 %v611_v46, %v609_v45  ;;  %v688_v45 = vld [vmem:[#allocation5 + $0x3a0] sm:$0xff] }
 0x287   :  { %v968_v49 = vmul.f32 -1.442695, %v386_v48  ;;  %v608_v48 = vld [vmem:[#allocation5 + $0x120] sm:$0xff] }
 0x288   :  { %1037 = vmatprep.subr.bf16.mxu0 %v1036_v47  ;;  %v690_v47 = vld [vmem:[#allocation5 + $0x3b0] sm:$0xff] }
 0x289   :  { %1139 = vpow2.f32 %v968_v49  ;;  %v610_v49 = vld [vmem:[#allocation5 + $0x130] sm:$0xff] }
 0x293   :  { %v1140_v51 = vpop.eup %1139 }
 0x294   :  { %v390_v54 = vadd.f32 1.0, %v1140_v51  ;;  %v1038_v51 = vpack.c.bf16 %v610_v49, %v608_v48  ;;  %v625_v48 = vld [vmem:[#allocation5 + $0x1a8] sm:$0xff]  ;;  %v627_v49 = vld [vmem:[#allocation5 + $0x1b8] sm:$0xff] }
 0x296   :  { %1141 = vrcp.f32 %v390_v54  ;;  %v1104_v54 = vpack.c.bf16 %v679_v53, %v677_v52  ;;  %1039 = vmatpush1.bf16.msra.mxu0 %v1038_v51  ;;  %v1118_v51 = vpack.c.bf16 %v690_v47, %v688_v45  ;;  %v1052_v52 = vpack.c.bf16 %v627_v49, %v625_v48  ;;  %v624_v53 = vld [vmem:[#allocation5 + $0x1a0] sm:$0xff] }
 0x297   :  { %1041 = vmatprep.subr.bf16.mxu0 %v1040_v61 }
 0x298   :  { %1105 = vmatprep.subr.bf16.mxu1 %v1104_v54  ;;  %v626_v54 = vld [vmem:[#allocation5 + $0x1b0] sm:$0xff] }
 0x299   :  { %1107 = vmatpush1.bf16.msra.mxu1 %v1106_v58  ;;  %v1054_v56 = vpack.c.bf16 %v626_v54, %v624_v53  ;;  %v695_v58 = vld [vmem:[#allocation5 + $0x3d8] sm:$0xff] }
 0x29a   :  { %1043 = vmatpush1.bf16.msra.mxu0 %v1042_v3  ;;  %1109 = vmatprep.subr.bf16.mxu1 %v1108_v11  ;;  %v1120_v61 = vpack.c.bf16 %v695_v58, %v693_v55  ;;  %v628_v3 = vld [vmem:[#allocation5 + $0x1c0] sm:$0xff]  ;;  %v630_v11 = vld [vmem:[#allocation5 + $0x1d0] sm:$0xff] }
 0x29b   :  { %1045 = vmatprep.subr.bf16.mxu0 %v1044_v25  ;;  %v698_v25 = vld [vmem:[#allocation5 + $0x3f0] sm:$0xff] }
 0x29c   :  { %v1126_v30 = vpack.c.bf16 %v698_v25, %v696_v24 }
 0x29d   :  { %1111 = vmatpush1.bf16.msra.mxu1 %v1110_v22  ;;  %v1058_v22 = vpack.c.bf16 %v630_v11, %v628_v3 }
 0x29e   :  { %1047 = vmatpush1.bf16.msra.mxu0 %v1046_v28  ;;  %1113 = vmatprep.subr.bf16.mxu1 %v1112_v32  ;;  %v634_v28 = vld [vmem:[#allocation5 + $0x1f0] sm:$0xff] }
 0x29f   :  { %1049 = vmatprep.subr.bf16.mxu0 %v1048_v38  ;;  %v1062_v32 = vpack.c.bf16 %v634_v28, %v632_v27 }
 0x2a0   :  { %v1142_v41 = vpop.eup %1141 }
 0x2a1   :  { %v396_v43 = vrot.slane %v1142_v41, %v1387_v31  ;;  %v1394_v57 = vrot.slane %v1142_v41, %v1391_v44  ;;  %v1050_v41 = vpack.c.bf16 %v622_v40, %v620_v39  ;;  %1115 = vmatpush1.bf16.msra.mxu1 %v1114_v35 }
 0x2a3   :  { %402 = vbcast.lane.b32.xlu1 %v396_v43, 264  ;;  %398 = vbcast.lane.b32.xlu0 %v396_v43, 256 }
 0x2a4   :  { %1051 = vmatpush1.bf16.msra.mxu0 %v1050_v41 }
 0x2a5   :  { %1053 = vmatprep.subr.bf16.mxu0 %v1052_v52 }
 0x2a7   :  { %417 = vbcast.lane.b32.xlu1 %v1394_v57, 256  ;;  %406 = vbcast.lane.b32.xlu0 %v396_v43, 272 }
 0x2a8   :  { %1055 = vmatpush1.bf16.msra.mxu0 %v1054_v56 }
 0x2a9   :  { %1057 = vmatprep.subr.bf16.mxu0 %v1056_v10 }
 0x2ab   :  { %421 = vbcast.lane.b32.xlu1 %v1394_v57, 264  ;;  %410 = vbcast.lane.b32.xlu0 %v396_v43, 280  ;;  %v691_v43 = vld [vmem:[#allocation5 + $0x3b8] sm:$0xff] }
 0x2ac   :  { %v1116_v46 = vpack.c.bf16 %v691_v43, %v689_v42  ;;  %1059 = vmatpush1.bf16.msra.mxu0 %v1058_v22 }
 0x2ae   :  { %1117 = vmatprep.subr.bf16.mxu1 %v1116_v46 }
 0x2af   :  { %425 = vbcast.lane.b32.xlu1 %v1394_v57, 272  ;;  %1119 = vmatpush1.bf16.msra.mxu1 %v1118_v51 }
 0x2b0   :  { %1121 = vmatprep.subr.bf16.mxu1 %v1120_v61 }
 0x2b3   :  { %429 = vbcast.lane.b32.xlu1 %v1394_v57, 280  ;;  %v635_v57 = vld [vmem:[#allocation5 + $0x1f8] sm:$0xff]  ;;  %1123 = vmatpush1.bf16.msra.mxu1 %v1122_v7 }
 0x2b4   :  { %v1060_v29 = vpack.c.bf16 %v635_v57, %v633_v26  ;;  %1125 = vmatprep.subr.bf16.mxu1 %v1124_v23 }
 0x2b6   :  { %1061 = vmatprep.subr.bf16.mxu0 %v1060_v29 }
 0x2b7   :  { %1127 = vmatpush1.bf16.msra.mxu1 %v1126_v30  ;;  %1063 = vmatpush1.bf16.msra.mxu0 %v1062_v32 }
 0x315   :  { %v403_v33 = vpop.permute.xlu1 %402  ;;  %v399_v34 = vpop.permute.xlu0 %398 }
 0x316   :  { %v433_v35 = vmul.f32 %v403_v33, %v1303_v8  ;;  %v434_v36 = vmul.f32 %v403_v33, %v1305_v9  ;;  %v431_v37 = vmul.f32 %v399_v34, %v1291_v2  ;;  %v432_v38 = vmul.f32 %v399_v34, %v1295_v4 }
 0x318   :  { %v449_v39 = vmax.f32 %v433_v35, 0.0  ;;  %v450_v40 = vmax.f32 %v434_v36, 0.0  ;;  %v447_v41 = vmax.f32 %v431_v37, 0.0  ;;  %v448_v42 = vmax.f32 %v432_v38, 0.0 }
 0x319   :  { %v418_v43 = vpop.permute.xlu1 %417  ;;  %v407_v45 = vpop.permute.xlu0 %406 }
 0x31a   :  { %v1405_v46 = vmul.f32 %v449_v39, %v1303_v8  ;;  %v1408_v47 = vmul.f32 %v450_v40, %v1305_v9  ;;  %v1411_v48 = vmul.f32 %v447_v41, %v1291_v2  ;;  %v1414_v49 = vmul.f32 %v448_v42, %v1295_v4 }
 0x31b   :  { %v439_v51 = vmul.f32 %v418_v43, %v1287_v0  ;;  %v440_v52 = vmul.f32 %v418_v43, %v1289_v1  ;;  %v435_v53 = vmul.f32 %v407_v45, %v1315_v14  ;;  %v436_v54 = vmul.f32 %v407_v45, %v1317_v15 }
 0x31c   :  { %v479_v8 = vadd.f32 %v1405_v46, %v1411_v48  ;;  %v488_v9 = vadd.f32 %v1408_v47, %v1414_v49  ;;  %v520_v3 = vmax.f32 %v1411_v48, %v1405_v46  ;;  %v529_v7 = vmax.f32 %v1414_v49, %v1408_v47 }
 0x31d   :  { %v455_v55 = vmax.f32 %v439_v51, 0.0  ;;  %v456_v2 = vmax.f32 %v440_v52, 0.0  ;;  %v451_v56 = vmax.f32 %v435_v53, 0.0  ;;  %v452_v58 = vmax.f32 %v436_v54, 0.0  ;;  %v422_v4 = vpop.permute.xlu1 %421  ;;  %v411_v59 = vpop.permute.xlu0 %410 }
 0x31e   :  { %v441_v60 = vmul.f32 %v422_v4, %v1297_v5  ;;  %v442_v61 = vmul.f32 %v422_v4, %v1299_v6  ;;  %v437_v62 = vmul.f32 %v411_v59, %v1327_v20  ;;  %v438_v63 = vmul.f32 %v411_v59, %v1329_v21 }
 0x31f   :  { %v1433_v10 = vmul.f32 %v451_v56, %v1315_v14  ;;  %v1436_v11 = vmul.f32 %v452_v58, %v1317_v15  ;;  %v1439_v24 = vmul.f32 %v455_v55, %v1287_v0  ;;  %v1442_v25 = vmul.f32 %v456_v2, %v1289_v1 }
 0x320   :  { %v457_v16 = vmax.f32 %v441_v60, 0.0  ;;  %v458_v17 = vmax.f32 %v442_v61, 0.0  ;;  %v453_v22 = vmax.f32 %v437_v62, 0.0  ;;  %v454_v23 = vmax.f32 %v438_v63, 0.0 }
 0x321   :  { %v480_v26 = vadd.f32 %v479_v8, %v1433_v10  ;;  %v489_v57 = vadd.f32 %v488_v9, %v1436_v11  ;;  %v426_v27 = vpop.permute.xlu1 %425  ;;  %v521_v1 = vmax.f32 %v520_v3, %v1433_v10  ;;  %v530_v29 = vmax.f32 %v529_v7, %v1436_v11 }
 0x322   :  { %v1447_v14 = vmul.f32 %v457_v16, %v1297_v5  ;;  %v1450_v15 = vmul.f32 %v458_v17, %v1299_v6  ;;  %v1453_v28 = vmul.f32 %v453_v22, %v1327_v20  ;;  %v1456_v0 = vmul.f32 %v454_v23, %v1329_v21 }
 0x323   :  { %v443_v30 = vmul.f32 %v426_v27, %v1311_v12  ;;  %v444_v32 = vmul.f32 %v426_v27, %v1313_v13 }
 0x324   :  { %v497_v5 = vadd.f32 %v1447_v14, %v1439_v24  ;;  %v506_v6 = vadd.f32 %v1450_v15, %v1442_v25  ;;  %v538_v20 = vmax.f32 %v1439_v24, %v1447_v14  ;;  %v547_v21 = vmax.f32 %v1442_v25, %v1450_v15 }
 0x325   :  { %v481_v33 = vadd.f32 %v480_v26, %v1453_v28  ;;  %v490_v34 = vadd.f32 %v489_v57, %v1456_v0  ;;  %v522_v35 = vmax.f32 %v521_v1, %v1453_v28  ;;  %v531_v36 = vmax.f32 %v530_v29, %v1456_v0  ;;  %v430_v37 = vpop.permute.xlu1 %429 }
 0x326   :  { %v459_v38 = vmax.f32 %v443_v30, 0.0  ;;  %v460_v39 = vmax.f32 %v444_v32, 0.0  ;;  %v445_v40 = vmul.f32 %v430_v37, %v1323_v18  ;;  %v446_v41 = vmul.f32 %v430_v37, %v1325_v19 }
 0x327   :  { %v482_v42 = vrot.slane %v481_v33, 4  ;;  %v523_v43 = vrot.slane %v522_v35, 4  ;;  %v532_v45 = vrot.slane %v531_v36, 4  ;;  %v491_v51 = vrot.slane %v490_v34, 4 }
 0x328   :  { %v1477_v52 = vmul.f32 %v459_v38, %v1311_v12  ;;  %v1480_v53 = vmul.f32 %v460_v39, %v1313_v13  ;;  %v461_v54 = vmax.f32 %v445_v40, 0.0  ;;  %v462_v8 = vmax.f32 %v446_v41, 0.0 }
 0x329   :  { %v533_v9 = vmax.f32 %v531_v36, %v532_v45  ;;  %v524_v55 = vmax.f32 %v522_v35, %v523_v43  ;;  %v492_v2 = vadd.f32 %v491_v51, %v490_v34  ;;  %v483_v56 = vadd.f32 %v482_v42, %v481_v33 }
 0x32a   :  { %v498_v58 = vadd.f32 %v497_v5, %v1477_v52  ;;  %v507_v4 = vadd.f32 %v506_v6, %v1480_v53  ;;  %v539_v59 = vmax.f32 %v538_v20, %v1477_v52  ;;  %v548_v60 = vmax.f32 %v547_v21, %v1480_v53 }
 0x32b   :  { %v1487_v12 = vmul.f32 %v461_v54, %v1323_v18  ;;  %v1490_v13 = vmul.f32 %v462_v8, %v1325_v19  ;;  %v534_v61 = vrot.slane %v533_v9, 2  ;;  %v525_v62 = vrot.slane %v524_v55, 2 }
 0x32c   :  { %v493_v63 = vrot.slane %v492_v2, 2  ;;  %v484_v3 = vrot.slane %v483_v56, 2 }
 0x32d   :  { %v499_v7 = vadd.f32 %v498_v58, %v1487_v12  ;;  %v508_v16 = vadd.f32 %v507_v4, %v1490_v13  ;;  %v540_v17 = vmax.f32 %v539_v59, %v1487_v12  ;;  %v549_v22 = vmax.f32 %v548_v60, %v1490_v13 }
 0x32e   :  { %v494_v23 = vadd.f32 %v493_v63, %v492_v2  ;;  %v485_v26 = vadd.f32 %v484_v3, %v483_v56  ;;  %v535_v19 = vmax.f32 %v533_v9, %v534_v61  ;;  %v526_v29 = vmax.f32 %v524_v55, %v525_v62 }
 0x32f   :  { %v500_v57 = vrot.slane %v499_v7, 4  ;;  %v541_v18 = vrot.slane %v540_v17, 4  ;;  %v550_v27 = vrot.slane %v549_v22, 4  ;;  %v509_v1 = vrot.slane %v508_v16, 4 }
 0x330   :  { %v495_v20 = vrot.slane %v494_v23, 1  ;;  %v486_v21 = vrot.slane %v485_v26, 1  ;;  %v536_v37 = vrot.slane %v535_v19, 1  ;;  %v527_v38 = vrot.slane %v526_v29, 1 }
 0x331   :  { %v551_v30 = vmax.f32 %v549_v22, %v550_v27  ;;  %v542_v32 = vmax.f32 %v540_v17, %v541_v18  ;;  %v510_v5 = vadd.f32 %v509_v1, %v508_v16  ;;  %v501_v6 = vadd.f32 %v500_v57, %v499_v7 }
 0x332   :  { %v496_v43 = vadd.f32 %v495_v20, %v494_v23  ;;  %v487_v45 = vadd.f32 %v486_v21, %v485_v26  ;;  %v537_v55 = vmax.f32 %v535_v19, %v536_v37  ;;  %v528_v2 = vmax.f32 %v526_v29, %v527_v38 }
 0x333   :  { %v552_v33 = vrot.slane %v551_v30, 2  ;;  %v543_v34 = vrot.slane %v542_v32, 2  ;;  %v511_v35 = vrot.slane %v510_v5, 2  ;;  %v502_v36 = vrot.slane %v501_v6, 2 }
 0x334   :  { %v517_v60 = vmul.f32 0.03125, %v496_v43  ;;  %v516_v61 = vmul.f32 0.03125, %v487_v45 }
 0x335   :  { %v553_v39 = vmax.f32 %v551_v30, %v552_v33  ;;  %v544_v40 = vmax.f32 %v542_v32, %v543_v34  ;;  %v512_v41 = vadd.f32 %v511_v35, %v510_v5  ;;  %v503_v42 = vadd.f32 %v502_v36, %v501_v6 }
 0x336   :  { %v1230_v6 = vmov 1966171168  }
 0x337   :  { %v554_v51 = vrot.slane %v553_v39, 1  ;;  %v545_v54 = vrot.slane %v544_v40, 1  ;;  %v513_v8 = vrot.slane %v512_v41, 1  ;;  %v504_v9 = vrot.slane %v503_v42, 1 }
 0x338   :  { %v858_v20 = vunpack.c.l.s4 %v1230_v6 }
 0x339   :  { %v555_v56 = vmax.f32 %v553_v39, %v554_v51  ;;  %v546_v58 = vmax.f32 %v544_v40, %v545_v54  ;;  %v514_v4 = vadd.f32 %v513_v8, %v512_v41  ;;  %v505_v59 = vadd.f32 %v504_v9, %v503_v42 }
 0x33a   :  { %v859_v21 = vunpack.c.0.s8 %v858_v20 }
 0x33b   :  { %v569_v62 = vsel %vm172_vm4, %v555_v56, %v537_v55  ;;  %v568_v63 = vsel %vm172_vm4, %v546_v58, %v528_v2  ;;  %v519_v3 = vmul.f32 0.03125, %v514_v4  ;;  %v518_v7 = vmul.f32 0.03125, %v505_v59 }
 0x33c   :  { %835 = vmatprep.mubr.f32.mxu1 %v569_v62  ;;  %v862_v34 = vsub.s32 %v859_v21, %v1363_v50 }
 0x33d   :  { %836 = vmatmul.mubr.f32.vlgmr.msra.gmra.mrb[2].mxu1 %v568_v63  ;;  %v561_v16 = vsel %vm172_vm4, %v519_v3, %v517_v60  ;;  %v560_v17 = vsel %vm172_vm4, %v518_v7, %v516_v61 }
 0x33e   :  { %764 = vmatprep.mubr.f32.mxu0 %v561_v16 }
 0x33f   :  { %765 = vmatmul.mubr.f32.vlgmr.msra.gmra.mrb[2].mxu0 %v560_v17 }
 0x410   :  { %v837_v22 = vpop.f32.mrb[2].mxu1 }
 0x411   :  { %v839_v23 = vpop.f32.mrb[3].mxu1 }
 0x412   :  { %v766_v26 = vpop.f32.mrb[2].mxu0 }
 0x413   :  { %v838_v57 = vadd.f32 %v837_v22, %v766_v26  ;;  %v768_v18 = vpop.f32.mrb[3].mxu0 }
 0x414   :  { %v840_v27 = vadd.f32 %v839_v23, %v768_v18 }
 0x415   :  { %v969_v1 = vmul.f32 -1.442695, %v838_v57 }
 0x416   :  { %v970_v19 = vmul.f32 -1.442695, %v840_v27 }
 0x417   :  { %1143 = vpow2.f32 %v969_v1 }
 0x418   :  { %1145 = vpow2.f32 %v970_v19 }
 0x421   :  { %v1144_v29 = vpop.eup %1143 }
 0x422   :  { %v1146_v30 = vpop.eup %1145  ;;  %v848_v32 = vadd.f32 1.0, %v1144_v29 }
 0x423   :  { %v849_v5 = vadd.f32 1.0, %v1146_v30 }
 0x424   :  { %1147 = vrcp.f32 %v848_v32 }
 0x425   :  { %1149 = vrcp.f32 %v849_v5 }
 0x42e   :  { %v1148_v33 = vpop.eup %1147 }
 0x42f   :  { %v1150_v35 = vpop.eup %1149 }
 0x430   :  { %v856_v36 = vcombine.low %v1148_v33, %v1150_v35 }
 0x432   :  { %v863_v37 = vrot.slane %v856_v36, %v862_v34 }
 0x434   :  { %v864_v38 = vcombine.high %v863_v37, %v863_v37  ;;  %v871_v39 = vrot.slane %v863_v37, %v862_v34 }
 0x436   :  { %v878_v40 = vrot.slane %v864_v38, %v862_v34  ;;  %v882_v41 = vrot.slane %v871_v39, %v1387_v31  ;;  %v886_v42 = vrot.slane %v871_v39, %v1391_v44 }
 0x438   :  { %v890_v43 = vrot.slane %v878_v40, %v1387_v31  ;;  %v894_v45 = vrot.slane %v878_v40, %v1391_v44  ;;  %v899_v51 = vmul.f32 %v882_v41, %v1411_v48  ;;  %v900_v54 = vmul.f32 %v886_v42, %v1414_v49 }
 0x439   :  { %v901_v50 = vmul.f32 %v882_v41, %v1405_v46  ;;  %v902_v8 = vmul.f32 %v886_v42, %v1408_v47  ;;  %v903_v9 = vmul.f32 %v882_v41, %v1433_v10  ;;  %v904_v55 = vmul.f32 %v886_v42, %v1436_v11 }
 0x43a   :  { %v905_v2 = vmul.f32 %v882_v41, %v1453_v28  ;;  %v906_v56 = vmul.f32 %v886_v42, %v1456_v0  ;;  %v907_v31 = vmul.f32 %v890_v43, %v1439_v24  ;;  %v908_v44 = vmul.f32 %v894_v45, %v1442_v25 }
 0x43b   :  { %v909_v58 = vmul.f32 %v890_v43, %v1447_v14  ;;  %v910_v4 = vmul.f32 %v894_v45, %v1450_v15  ;;  %v911_v59 = vmul.f32 %v890_v43, %v1477_v52  ;;  %v912_v60 = vmul.f32 %v894_v45, %v1480_v53 }
 0x43c   :  { %v913_v61 = vmul.f32 %v890_v43, %v1487_v12  ;;  %v914_v62 = vmul.f32 %v894_v45, %v1490_v13  ;;  %v915_v63 = vmul.f32 %v899_v51, %v1411_v48  ;;  %v916_v3 = vmul.f32 %v900_v54, %v1414_v49 }
 0x43d   :  { %v917_v7 = vmul.f32 %v901_v50, %v1405_v46  ;;  %v918_v16 = vmul.f32 %v902_v8, %v1408_v47  ;;  %v919_v17 = vmul.f32 %v903_v9, %v1433_v10  ;;  %v920_v22 = vmul.f32 %v904_v55, %v1436_v11 }
 0x43e   :  { %v921_v23 = vmul.f32 %v905_v2, %v1453_v28  ;;  %v922_v26 = vmul.f32 %v906_v56, %v1456_v0  ;;  %v923_v57 = vmul.f32 %v907_v31, %v1439_v24  ;;  %v924_v48 = vmul.f32 %v908_v44, %v1442_v25  ;;  %931 = vst [vmem:[#allocation7] sm:$0xff] %v915_v63 }
 0x43f   :  { %932 = vst [vmem:[#allocation7 + $0x8] sm:$0xff] %v916_v3  ;;  %v925_v46 = vmul.f32 %v909_v58, %v1447_v14  ;;  %v926_v47 = vmul.f32 %v910_v4, %v1450_v15  ;;  %v927_v49 = vmul.f32 %v911_v59, %v1477_v52  ;;  %v928_v10 = vmul.f32 %v912_v60, %v1480_v53 }
 0x440   :  { %933 = vst [vmem:[#allocation7 + $0x10] sm:$0xff] %v917_v7  ;;  %934 = vst [vmem:[#allocation7 + $0x18] sm:$0xff] %v918_v16  ;;  %v929_v11 = vmul.f32 %v913_v61, %v1487_v12  ;;  %v930_v24 = vmul.f32 %v914_v62, %v1490_v13 }
 0x441   :  { %935 = vst [vmem:[#allocation7 + $0x20] sm:$0xff] %v919_v17  ;;  %936 = vst [vmem:[#allocation7 + $0x28] sm:$0xff] %v920_v22 }
 0x442   :  { %937 = vst [vmem:[#allocation7 + $0x30] sm:$0xff] %v921_v23  ;;  %938 = vst [vmem:[#allocation7 + $0x38] sm:$0xff] %v922_v26 }
 0x443   :  { %939 = vst [vmem:[#allocation7 + $0x40] sm:$0xff] %v923_v57  ;;  %940 = vst [vmem:[#allocation7 + $0x48] sm:$0xff] %v924_v48 }
 0x444   :  { %941 = vst [vmem:[#allocation7 + $0x50] sm:$0xff] %v925_v46  ;;  %942 = vst [vmem:[#allocation7 + $0x58] sm:$0xff] %v926_v47 }
 0x445   :  { %943 = vst [vmem:[#allocation7 + $0x60] sm:$0xff] %v927_v49  ;;  %944 = vst [vmem:[#allocation7 + $0x68] sm:$0xff] %v928_v10 }
 0x446   :  { %945 = vst [vmem:[#allocation7 + $0x70] sm:$0xff] %v929_v11  ;;  %946 = vst [vmem:[#allocation7 + $0x78] sm:$0xff] %v930_v24 }
 0x447   :  { %1206 = shalt.err (!%p1203_p6)
}
 0x448   :  { %s1207_s28 = scalar_lea.hbm %s1556_s4, 2048 }
 0x449   :  { %p1208_p7 = scmp.ne.s32.totalorder %s1556_s4, %s1207_s28  ;;  %p1211_p8 = scmp.lt.u32.totalorder %s1207_s28, %s1556_s4 }
 0x44b   :  { %p1213_p9 = pnand %p1211_p8, %p1208_p7 }
 0x44d   :  { %1216 = shalt.err (!%p1213_p9)
}
 0x44e   :  { %958 = dma.vmem_to_hbm [thread:$0]  %s953_s22, 2048, %s1556_s4, [#allocation4], %s1224_s25, %s1224_s25, %s1225_s26  }
 0x44f   :  { %1221 = dma.done.wait [#allocation4], 2048  }
 0x450   :  { %1222 = vsyncadd [#allocation4], 4294965248 }
 0x451   :  { %962 = vsyncpa [#allocation3], 1 }
 0x452   :  { %963 = vsyncpa [#allocation6], 1 }
 0x453   :  { %964 = vsyncpa [#allocation4], 1 }

// kernel: tpu_custom_call.1
= control target key start
LH: loop header
LB: loop body
LE: loop exit
PB: predicated region body
PF: predicated region fallthrough
CT: control target
= control target key end

     0   :  { %9 = vsyncpa [#allocation3], 0  ;;  %s1552_s0 = inlined_call_operand.hbm [shape: f32[2,32,256], index: 0, kind: input, shape index: {}]   ;;  %s1553_s1 = inlined_call_operand.vmem [shape: f32[32,2], index: 1, kind: input, shape index: {}]   ;;  %s1554_s2 = inlined_call_operand.vmem [shape: f32[2,32], index: 2, kind: input, shape index: {}]   ;;  %s1555_s3 = inlined_call_operand.hbm [shape: f32[512,256], index: 3, kind: input, shape index: {}]   ;;  %s1556_s4 = inlined_call_operand.hbm [shape: f32[2,32,256], index: 4, kind: output, shape index: {}]  }
   0x1   :  { %10 = vsyncpa [#allocation6], 0 }
   0x2   :  { %11 = vsyncpa [#allocation4], 0  ;;  %s1223_s15 = smov [#allocation2]   ;;  %s1151_s19 = scalar_lea.hbm %s1552_s0, 2048 }
   0x3   :  { %s17_s16 = sshll.u32 %s1223_s15, 4  ;;  %p1152_p0 = scmp.ne.s32.totalorder %s1552_s0, %s1151_s19  ;;  %s18_s16 = int_to_ptr.vmem [resolvable:$true] %s17_s16 }
   0x4   :  { %p1155_p1 = scmp.lt.u32.totalorder %s1151_s19, %s1552_s0 }
   0x6   :  { %p1157_p2 = pnand %p1155_p1, %p1152_p0 }
   0x8   :  { %1160 = shalt.err (!%p1157_p2)
}
   0x9   :  { %s1161_s24 = scalar_lea.vmem %s18_s16, 2048  ;;  %p1166_p4 = scmp.lt.s32.totalorder %s18_s16, %s18_s16 }
   0xa   :  { %p1162_p3 = scmp.ne.s32.totalorder %s18_s16, %s1161_s24  ;;  %p1167_p5 = scmp.lt.s32.totalorder %s1161_s24, %s1161_s24 }
   0xc   :  { %p1168_p6 = por %p1167_p5, %p1166_p4 }
   0xe   :  { %p1169_p7 = pnand %p1168_p6, %p1162_p3 }
  0x10   :  { %1172 = shalt.err (!%p1169_p7)
}
  0x11   :  { %s1224_s25 = smov 256   ;;  %s1225_s26 = smov 16  }
  0x12   :  { %23 = dma.hbm_to_vmem [thread:$0]  %s1552_s0, 2048, %s18_s16, [#allocation3], %s1224_s25, %s1224_s25, %s1225_s26  }
  0x13   :  { %s1226_s29 = smov [#allocation5]   ;;  %s1173_s7 = scalar_lea.hbm %s1555_s3, 16384 }
  0x14   :  { %s33_s30 = sshll.u32 %s1226_s29, 4  ;;  %p1174_p8 = scmp.ne.s32.totalorder %s1555_s3, %s1173_s7  ;;  %s34_s30 = int_to_ptr.vmem [resolvable:$true] %s33_s30 }
  0x15   :  { %p1177_p9 = scmp.lt.u32.totalorder %s1173_s7, %s1555_s3 }
  0x17   :  { %p1179_p10 = pnand %p1177_p9, %p1174_p8 }
  0x19   :  { %1182 = shalt.err (!%p1179_p10)
}
  0x1a   :  { %s1183_s12 = scalar_lea.vmem %s34_s30, 16384  ;;  %p1188_p12 = scmp.lt.s32.totalorder %s34_s30, %s34_s30 }
  0x1b   :  { %p1184_p11 = scmp.ne.s32.totalorder %s34_s30, %s1183_s12  ;;  %p1189_p13 = scmp.lt.s32.totalorder %s1183_s12, %s1183_s12 }
  0x1d   :  { %p1190_p0 = por %p1189_p13, %p1188_p12 }
  0x1f   :  { %p1191_p1 = pnand %p1190_p0, %p1184_p11 }
  0x21   :  { %1194 = shalt.err (!%p1191_p1)
}
  0x22   :  { %39 = dma.hbm_to_vmem [thread:$0]  %s1555_s3, 16384, %s34_s30, [#allocation6], %s1224_s25, %s1224_s25, %s1225_s26  }
  0x23   :  { %1217 = dma.done.wait [#allocation3], 2048  }
  0x24   :  { %1218 = vsyncadd [#allocation3], 4294965248 }
  0x25   :  { %1219 = dma.done.wait [#allocation6], 16384  }
  0x26   :  { %1220 = vsyncadd [#allocation6], 4294950912  ;;  %v1287_v0 = vld [vmem:[#allocation2 + $0x40] sm:$0xff]  ;;  %v1289_v1 = vld [vmem:[#allocation2 + $0x48] sm:$0xff]  ;;  %v1227_v35 = vmov 0.0|0.0   ;;  %vm1228_vm0 = vmmov 0   ;;  %v126_v45 = vlaneseq }
  0x27   :  { %v1291_v2 = vld [vmem:[#allocation2] sm:$0xff]  ;;  %v74_v3 = vadd.f32 %v1289_v1, %v1287_v0  ;;  %v1295_v4 = vld [vmem:[#allocation2 + $0x8] sm:$0xff]  ;;  %v1297_v5 = vld [vmem:[#allocation2 + $0x50] sm:$0xff]  ;;  %v106_v27 = vmax.f32 %v1287_v0, %v1289_v1  ;;  %994 = vmatprep.subr.bf16.mxu0 %v1227_v35  ;;  %v1229_v39 = vmov 0.0   ;;  %vm137_vm1 = vcmask 130112  }
  0x28   :  { %v1299_v6 = vld [vmem:[#allocation2 + $0x58] sm:$0xff]  ;;  %v62_v7 = vadd.f32 %v1295_v4, %v1291_v2  ;;  %v1303_v8 = vld [vmem:[#allocation2 + $0x10] sm:$0xff]  ;;  %v1311_v12 = vld [vmem:[#allocation2 + $0x60] sm:$0xff]  ;;  %v94_v25 = vmax.f32 %v1291_v2, %v1295_v4  ;;  %986 = vmatprep.mubr.msk.f32.mxu0 %vm1228_vm0, %v1229_v39  ;;  %989 = vmatprep.subr.mxu1 %v1229_v39  ;;  %v127_v48 = vand.u32 127, %v126_v45  ;;  %v1363_v50 = vshrl.u32 %v126_v45, 7 }
  0x29   :  { %v1305_v9 = vld [vmem:[#allocation2 + $0x18] sm:$0xff]  ;;  %75 = vadd.xlane.f32.xlu1 %v74_v3  ;;  %v77_v10 = vadd.f32 %v1299_v6, %v1297_v5  ;;  %v1313_v13 = vld [vmem:[#allocation2 + $0x68] sm:$0xff]  ;;  %v1315_v14 = vld [vmem:[#allocation2 + $0x20] sm:$0xff]  ;;  %v109_v26 = vmax.f32 %v1297_v5, %v1299_v6  ;;  %991 = vmatprep.mubr.msk.f32.mxu1 %vm1228_vm0, %v1229_v39  ;;  %vm144_vm2 = vcmask 195712   ;;  %vm151_vm3 = vcmask 261312  }
  0x2a   :  { %63 = vadd.xlane.f32.xlu0 %v62_v7  ;;  %v65_v11 = vadd.f32 %v1305_v9, %v1303_v8  ;;  %v1317_v15 = vld [vmem:[#allocation2 + $0x28] sm:$0xff]  ;;  %v80_v16 = vadd.f32 %v1313_v13, %v1311_v12  ;;  %v1323_v18 = vld [vmem:[#allocation2 + $0x70] sm:$0xff]  ;;  %v1325_v19 = vld [vmem:[#allocation2 + $0x78] sm:$0xff]  ;;  %v97_v24 = vmax.f32 %v1303_v8, %v1305_v9  ;;  %v112_v28 = vmax.f32 %v1311_v12, %v1313_v13 }
  0x2b   :  { %v68_v17 = vadd.f32 %v1317_v15, %v1315_v14  ;;  %v1327_v20 = vld [vmem:[#allocation2 + $0x30] sm:$0xff]  ;;  %v1329_v21 = vld [vmem:[#allocation2 + $0x38] sm:$0xff]  ;;  %v83_v22 = vadd.f32 %v1325_v19, %v1323_v18  ;;  %v100_v29 = vmax.f32 %v1315_v14, %v1317_v15  ;;  %v115_v30 = vmax.f32 %v1323_v18, %v1325_v19  ;;  %v226_v32 = vld [vmem:[%s1553_s1] sm:$0xff] }
  0x2c   :  { %v71_v23 = vadd.f32 %v1329_v21, %v1327_v20  ;;  %v103_v31 = vmax.f32 %v1327_v20, %v1329_v21  ;;  %v227_v33 = vld [vmem:[%s1553_s1 + $0x8] sm:$0xff]  ;;  %v228_v36 = vld [vmem:[%s1553_s1 + $0x10] sm:$0xff]  ;;  %v229_v37 = vld [vmem:[%s1553_s1 + $0x18] sm:$0xff]  ;;  %v132_v51 = vadd.s32 4294967288, %v127_v48  ;;  %v139_v52 = vadd.s32 4294967280, %v127_v48 }
  0x2d   :  { %78 = vadd.xlane.f32.xlu1 %v77_v10  ;;  %v995_v34 = vpack.c.bf16 %v227_v33, %v226_v32  ;;  %v998_v38 = vpack.c.bf16 %v229_v37, %v228_v36  ;;  %v146_v54 = vadd.s32 4294967272, %v127_v48  ;;  %v130_v56 = vsub.s32 %v127_v48, %v1363_v50 }
  0x2e   :  { %66 = vadd.xlane.f32.xlu0 %v65_v11  ;;  %v135_v57 = vsub.s32 %v132_v51, %v1363_v50  ;;  %v142_v59 = vsub.s32 %v139_v52, %v1363_v50  ;;  %vm172_vm4 = vcmask 1041409   ;;  %vm221_vm5 = vcmask 1043459  }
  0x2f   :  { %996 = vmatpush3.bf16.msra.mxu0 %v995_v34  ;;  %v149_v10 = vsub.s32 %v146_v54, %v1363_v50  ;;  %vm224_vm6 = vcmask 1041408   ;;  %vm230_vm7 = vcmask 261120   ;;  %vm306_vm8 = vcmask 15360  }
  0x30   :  { %997 = vmatprep.subr.bf16.mxu0 %v1227_v35 }
  0x31   :  { %81 = vadd.xlane.f32.xlu1 %v80_v16 }
  0x32   :  { %69 = vadd.xlane.f32.xlu0 %v68_v17 }
  0x33   :  { %999 = vmatpush3.bf16.msra.mxu0 %v998_v38 }
  0x35   :  { %84 = vadd.xlane.f32.xlu1 %v83_v22 }
  0x36   :  { %72 = vadd.xlane.f32.xlu0 %v71_v23 }
  0x39   :  { %98 = vmax.xlane.f32.xlu1 %v97_v24 }
  0x3a   :  { %95 = vmax.xlane.f32.xlu0 %v94_v25 }
  0x3d   :  { %110 = vmax.xlane.f32.xlu1 %v109_v26 }
  0x3e   :  { %107 = vmax.xlane.f32.xlu0 %v106_v27 }
  0x41   :  { %113 = vmax.xlane.f32.xlu1 %v112_v28 }
  0x42   :  { %101 = vmax.xlane.f32.xlu0 %v100_v29 }
  0x45   :  { %116 = vmax.xlane.f32.xlu1 %v115_v30 }
  0x46   :  { %104 = vmax.xlane.f32.xlu0 %v103_v31 }
  0xb6   :  { %v76_v40 = vpop.xlane.xlu1 %75 }
  0xb7   :  { %v64_v41 = vpop.xlane.xlu0 %63  ;;  %v90_v60 = vmul.f32 0.00390625, %v76_v40 }
  0xb8   :  { %v86_v61 = vmul.f32 0.00390625, %v64_v41 }
  0xb9   :  { %v156_v23 = vrot.slane %v90_v60, %v130_v56 }
  0xba   :  { %v79_v42 = vpop.xlane.xlu1 %78  ;;  %v131_v24 = vrot.slane %v86_v61, %v130_v56 }
  0xbb   :  { %v67_v43 = vpop.xlane.xlu0 %66  ;;  %v91_v58 = vmul.f32 0.00390625, %v79_v42 }
  0xbc   :  { %v87_v62 = vmul.f32 0.00390625, %v67_v43 }
  0xbd   :  { %v160_v22 = vrot.slane %v91_v58, %v135_v57  ;;  %v305_v58 = vld [vmem:[%s1554_s2] sm:$0x3]  ;;  %s1231_s2 = smov [#allocation7]  }
  0xbe   :  { %v82_v44 = vpop.xlane.xlu1 %81  ;;  %v136_v25 = vrot.slane %v87_v62, %v135_v57  ;;  %990 = vmatpush3.msk.msra.mxu1 %vm224_vm6, %v305_v58  ;;  %v637_v62 = vld [vmem:[#allocation5 + $0x208] sm:$0xff]  ;;  %s952_s22 = sshll.u32 %s1231_s2, 4  ;;  %s953_s22 = int_to_ptr.vmem [resolvable:$true] %s952_s22 }
  0xbf   :  { %v70_v46 = vpop.xlane.xlu0 %69  ;;  %v92_v63 = vmul.f32 0.00390625, %v82_v44  ;;  %v161_v37 = vsel %vm137_vm1, %v160_v22, %v156_v23  ;;  %v572_v23 = vld [vmem:[#allocation5] sm:$0xff]  ;;  %s1195_s23 = scalar_lea.vmem %s953_s22, 2048  ;;  %p1200_p3 = scmp.lt.s32.totalorder %s953_s22, %s953_s22 }
  0xc0   :  { %v88_v7 = vmul.f32 0.00390625, %v70_v46  ;;  %v138_v39 = vsel %vm137_vm1, %v136_v25, %v131_v24  ;;  %v574_v24 = vld [vmem:[#allocation5 + $0x10] sm:$0xff]  ;;  %v641_v25 = vld [vmem:[#allocation5 + $0x228] sm:$0xff]  ;;  %p1196_p2 = scmp.ne.s32.totalorder %s953_s22, %s1195_s23  ;;  %p1201_p4 = scmp.lt.s32.totalorder %s1195_s23, %s1195_s23 }
  0xc1   :  { %v165_v26 = vrot.slane %v92_v63, %v142_v59  ;;  %v639_v63 = vld [vmem:[#allocation5 + $0x218] sm:$0xff] }
  0xc2   :  { %v85_v47 = vpop.xlane.xlu1 %84  ;;  %v143_v28 = vrot.slane %v88_v7, %v142_v59  ;;  %v1064_v7 = vpack.c.bf16 %v639_v63, %v637_v62  ;;  %v655_v62 = vld [vmem:[#allocation5 + $0x298] sm:$0xff]  ;;  %p1202_p5 = por %p1201_p4, %p1200_p3 }
  0xc3   :  { %v73_v49 = vpop.xlane.xlu0 %72  ;;  %v93_v11 = vmul.f32 0.00390625, %v85_v47  ;;  %v166_v40 = vsel %vm144_vm2, %v165_v26, %v161_v37  ;;  %v1002_v26 = vpack.c.bf16 %v574_v24, %v572_v23  ;;  %v645_v37 = vld [vmem:[#allocation5 + $0x248] sm:$0xff]  ;;  %v590_v24 = vld [vmem:[#allocation5 + $0x90] sm:$0xff] }
  0xc4   :  { %v89_v17 = vmul.f32 0.00390625, %v73_v49  ;;  %v145_v42 = vsel %vm144_vm2, %v143_v28, %v138_v39  ;;  %1065 = vmatprep.subr.bf16.mxu1 %v1064_v7  ;;  %v640_v28 = vld [vmem:[#allocation5 + $0x220] sm:$0xff]  ;;  %v591_v7 = vld [vmem:[#allocation5 + $0x98] sm:$0xff]  ;;  %p1203_p6 = pnand %p1202_p5, %p1196_p2 }
  0xc5   :  { %v170_v29 = vrot.slane %v93_v11, %v149_v10  ;;  %v573_v11 = vld [vmem:[#allocation5 + $0x8] sm:$0xff] }
  0xc6   :  { %v99_v53 = vpop.xlane.xlu1 %98  ;;  %v150_v33 = vrot.slane %v89_v17, %v149_v10 }
  0xc7   :  { %v96_v55 = vpop.xlane.xlu0 %95  ;;  %v190_v34 = vrot.slane %v99_v53, %v135_v57  ;;  %v171_v43 = vsel %vm151_vm3, %v170_v29, %v166_v40  ;;  %v642_v29 = vld [vmem:[#allocation5 + $0x230] sm:$0xff] }
  0xc8   :  { %v186_v35 = vrot.slane %v96_v55, %v130_v56  ;;  %v152_v47 = vsel %vm151_vm3, %v150_v33, %v145_v42  ;;  %v579_v33 = vld [vmem:[#allocation5 + $0x38] sm:$0xff]  ;;  %v646_v42 = vld [vmem:[#allocation5 + $0x250] sm:$0xff] }
  0xc9   :  { %v173_v55 = vsel %vm172_vm4, %v171_v43, %v152_v47  ;;  %v581_v43 = vld [vmem:[#allocation5 + $0x48] sm:$0xff] }
  0xca   :  { %v111_v3 = vpop.xlane.xlu1 %110  ;;  %v191_v48 = vsel %vm137_vm1, %v190_v34, %v186_v35  ;;  %v576_v34 = vld [vmem:[#allocation5 + $0x20] sm:$0xff] }
  0xcb   :  { %v108_v16 = vpop.xlane.xlu0 %107  ;;  %v209_v30 = vrot.slane %v111_v3, %v135_v57  ;;  %v636_v3 = vld [vmem:[#allocation5 + $0x200] sm:$0xff] }
  0xcc   :  { %v205_v31 = vrot.slane %v108_v16, %v130_v56  ;;  %v575_v16 = vld [vmem:[#allocation5 + $0x18] sm:$0xff] }
  0xcd   :  { %v1000_v22 = vpack.c.bf16 %v575_v16, %v573_v11  ;;  %v652_v16 = vld [vmem:[#allocation5 + $0x280] sm:$0xff] }
  0xce   :  { %v114_v27 = vpop.xlane.xlu1 %113  ;;  %v210_v44 = vsel %vm137_vm1, %v209_v30, %v205_v31  ;;  %v1070_v31 = vpack.c.bf16 %v642_v29, %v640_v28  ;;  %v595_v28 = vld [vmem:[#allocation5 + $0xb8] sm:$0xff] }
  0xcf   :  { %v102_v32 = vpop.xlane.xlu0 %101  ;;  %v214_v36 = vrot.slane %v114_v27, %v142_v59  ;;  %v643_v27 = vld [vmem:[#allocation5 + $0x238] sm:$0xff]  ;;  %1001 = vmatprep.subr.bf16.mxu0 %v1000_v22  ;;  %v588_v22 = vld [vmem:[#allocation5 + $0x80] sm:$0xff] }
  0xd0   :  { %v195_v38 = vrot.slane %v102_v32, %v142_v59  ;;  %v1068_v30 = vpack.c.bf16 %v643_v27, %v641_v25  ;;  %v577_v32 = vld [vmem:[#allocation5 + $0x28] sm:$0xff] }
  0xd1   :  { %v215_v49 = vsel %vm144_vm2, %v214_v36, %v210_v44  ;;  %v1004_v35 = vpack.c.bf16 %v579_v33, %v577_v32  ;;  %v578_v36 = vld [vmem:[#allocation5 + $0x30] sm:$0xff]  ;;  %v583_v44 = vld [vmem:[#allocation5 + $0x58] sm:$0xff]  ;;  %v657_v25 = vld [vmem:[#allocation5 + $0x2a8] sm:$0xff] }
  0xd2   :  { %v117_v41 = vpop.xlane.xlu1 %116  ;;  %v196_v52 = vsel %vm144_vm2, %v195_v38, %v191_v48  ;;  %v647_v38 = vld [vmem:[#allocation5 + $0x258] sm:$0xff]  ;;  %v1006_v39 = vpack.c.bf16 %v578_v36, %v576_v34  ;;  %v1008_v48 = vpack.c.bf16 %v583_v44, %v581_v43  ;;  %v593_v27 = vld [vmem:[#allocation5 + $0xa8] sm:$0xff]  ;;  %v656_v32 = vld [vmem:[#allocation5 + $0x2a0] sm:$0xff] }
  0xd3   :  { %v219_v45 = vrot.slane %v117_v41, %v149_v10  ;;  %v105_v46 = vpop.xlane.xlu0 %104  ;;  %v1072_v40 = vpack.c.bf16 %v647_v38, %v645_v37  ;;  %v644_v41 = vld [vmem:[#allocation5 + $0x240] sm:$0xff]  ;;  %v658_v33 = vld [vmem:[#allocation5 + $0x2b0] sm:$0xff]  ;;  %v661_v37 = vld [vmem:[#allocation5 + $0x2c8] sm:$0xff] }
  0xd4   :  { %v200_v51 = vrot.slane %v105_v46, %v149_v10  ;;  %v638_v10 = vld [vmem:[#allocation5 + $0x210] sm:$0xff]  ;;  %v1074_v47 = vpack.c.bf16 %v646_v42, %v644_v41  ;;  %v592_v34 = vld [vmem:[#allocation5 + $0xa0] sm:$0xff]  ;;  %v663_v38 = vld [vmem:[#allocation5 + $0x2d8] sm:$0xff] }
  0xd5   :  { %v220_v53 = vsel %vm151_vm3, %v219_v45, %v215_v49  ;;  %v1066_v17 = vpack.c.bf16 %v638_v10, %v636_v3  ;;  %v580_v45 = vld [vmem:[#allocation5 + $0x40] sm:$0xff]  ;;  %v582_v46 = vld [vmem:[#allocation5 + $0x50] sm:$0xff]  ;;  %v649_v49 = vld [vmem:[#allocation5 + $0x268] sm:$0xff]  ;;  %v1088_v41 = vpack.c.bf16 %v663_v38, %v661_v37 }
  0xd6   :  { %v201_v54 = vsel %vm151_vm3, %v200_v51, %v196_v52  ;;  %v651_v51 = vld [vmem:[#allocation5 + $0x278] sm:$0xff]  ;;  %v648_v52 = vld [vmem:[#allocation5 + $0x260] sm:$0xff]  ;;  %v589_v3 = vld [vmem:[#allocation5 + $0x88] sm:$0xff] }
  0xd7   :  { %v222_v56 = vsel %vm221_vm5, %v220_v53, %v201_v54  ;;  %v1010_v53 = vpack.c.bf16 %v582_v46, %v580_v45  ;;  %v1076_v54 = vpack.c.bf16 %v651_v51, %v649_v49  ;;  %v1016_v23 = vpack.c.bf16 %v591_v7, %v589_v3  ;;  %v594_v36 = vld [vmem:[#allocation5 + $0xb0] sm:$0xff]  ;;  %v660_v42 = vld [vmem:[#allocation5 + $0x2c0] sm:$0xff]  ;;  %v601_v7 = vld [vmem:[#allocation5 + $0xe8] sm:$0xff] }
  0xd8   :  { %v225_v57 = vsel %vm224_vm6, %v173_v55, %v222_v56  ;;  %v650_v55 = vld [vmem:[#allocation5 + $0x270] sm:$0xff]  ;;  %v585_v56 = vld [vmem:[#allocation5 + $0x68] sm:$0xff]  ;;  %v675_v37 = vld [vmem:[#allocation5 + $0x338] sm:$0xff] }
  0xd9   :  { %987 = vmatmul.mubr.msk.f32.vlgmr.msra.gmra.mrb[0].mxu0 %vm230_vm7, %v225_v57  ;;  %v587_v57 = vld [vmem:[#allocation5 + $0x78] sm:$0xff]  ;;  %v1078_v63 = vpack.c.bf16 %v650_v55, %v648_v52  ;;  %v662_v43 = vld [vmem:[#allocation5 + $0x2d0] sm:$0xff]  ;;  %v597_v52 = vld [vmem:[#allocation5 + $0xc8] sm:$0xff] }
  0xda   :  { %1003 = vmatpush1.bf16.msra.mxu0 %v1002_v26  ;;  %v1012_v58 = vpack.c.bf16 %v587_v57, %v585_v56  ;;  %v659_v26 = vld [vmem:[#allocation5 + $0x2b8] sm:$0xff]  ;;  %v1090_v44 = vpack.c.bf16 %v662_v43, %v660_v42  ;;  %v596_v56 = vld [vmem:[#allocation5 + $0xc0] sm:$0xff]  ;;  %v598_v57 = vld [vmem:[#allocation5 + $0xd0] sm:$0xff] }
  0xdb   :  { %1005 = vmatprep.subr.bf16.mxu0 %v1004_v35  ;;  %v1020_v35 = vpack.c.bf16 %v595_v28, %v593_v27  ;;  %v670_v27 = vld [vmem:[#allocation5 + $0x310] sm:$0xff] }
  0xde   :  { %1007 = vmatpush1.bf16.msra.mxu0 %v1006_v39  ;;  %v1086_v39 = vpack.c.bf16 %v658_v33, %v656_v32  ;;  %v604_v33 = vld [vmem:[#allocation5 + $0x100] sm:$0xff] }
  0xdf   :  { %1009 = vmatprep.subr.bf16.mxu0 %v1008_v48 }
  0xe2   :  { %1011 = vmatpush1.bf16.msra.mxu0 %v1010_v53  ;;  %v599_v53 = vld [vmem:[#allocation5 + $0xd8] sm:$0xff] }
  0xe3   :  { %1013 = vmatprep.subr.bf16.mxu0 %v1012_v58  ;;  %v1024_v55 = vpack.c.bf16 %v599_v53, %v597_v52  ;;  %v1026_v58 = vpack.c.bf16 %v598_v57, %v596_v56  ;;  %v677_v52 = vld [vmem:[#allocation5 + $0x348] sm:$0xff]  ;;  %v679_v53 = vld [vmem:[#allocation5 + $0x358] sm:$0xff]  ;;  %v678_v56 = vld [vmem:[#allocation5 + $0x350] sm:$0xff] }
 0x1ac   :  { %v300_v59 = vpop.f32.mrb[0].mxu0 }
 0x1ad   :  { %v304_v60 = vmax.f32 %v300_v59, 0.0  ;;  %v988_v61 = vpop.f32.mrb[1].mxu0  ;;  %v584_v59 = vld [vmem:[#allocation5 + $0x60] sm:$0xff] }
 0x1ae   :  { %v653_v61 = vld [vmem:[#allocation5 + $0x288] sm:$0xff] }
 0x1af   :  { %992 = vmatmul.mubr.msk.f32.vlgmr.msra.gmra.mrb[0].mxu1 %vm306_vm8, %v304_v60  ;;  %v586_v60 = vld [vmem:[#allocation5 + $0x70] sm:$0xff]  ;;  %v1080_v11 = vpack.c.bf16 %v655_v62, %v653_v61  ;;  %v664_v62 = vld [vmem:[#allocation5 + $0x2e0] sm:$0xff] }
 0x1b0   :  { %1067 = vmatpush1.bf16.msra.mxu1 %v1066_v17  ;;  %v1014_v10 = vpack.c.bf16 %v586_v60, %v584_v59  ;;  %v654_v17 = vld [vmem:[#allocation5 + $0x290] sm:$0xff]  ;;  %v665_v59 = vld [vmem:[#allocation5 + $0x2e8] sm:$0xff]  ;;  %v667_v60 = vld [vmem:[#allocation5 + $0x2f8] sm:$0xff] }
 0x1b1   :  { %1069 = vmatprep.subr.bf16.mxu1 %v1068_v30  ;;  %v1082_v29 = vpack.c.bf16 %v654_v17, %v652_v16  ;;  %v1018_v30 = vpack.c.bf16 %v590_v24, %v588_v22  ;;  %v1092_v61 = vpack.c.bf16 %v667_v60, %v665_v59  ;;  %v600_v16 = vld [vmem:[#allocation5 + $0xe0] sm:$0xff]  ;;  %v602_v17 = vld [vmem:[#allocation5 + $0xf0] sm:$0xff]  ;;  %v671_v24 = vld [vmem:[#allocation5 + $0x318] sm:$0xff] }
 0x1b2   :  { %1015 = vmatpush1.bf16.msra.mxu0 %v1014_v10  ;;  %v603_v10 = vld [vmem:[#allocation5 + $0xf8] sm:$0xff]  ;;  %v1030_v22 = vpack.c.bf16 %v602_v17, %v600_v16  ;;  %v613_v59 = vld [vmem:[#allocation5 + $0x148] sm:$0xff]  ;;  %v680_v16 = vld [vmem:[#allocation5 + $0x360] sm:$0xff] }
 0x1b3   :  { %1017 = vmatprep.subr.bf16.mxu0 %v1016_v23  ;;  %v669_v23 = vld [vmem:[#allocation5 + $0x308] sm:$0xff]  ;;  %v615_v60 = vld [vmem:[#allocation5 + $0x158] sm:$0xff]  ;;  %v682_v17 = vld [vmem:[#allocation5 + $0x370] sm:$0xff] }
 0x1b4   :  { %1071 = vmatpush1.bf16.msra.mxu1 %v1070_v31  ;;  %v1084_v31 = vpack.c.bf16 %v659_v26, %v657_v25  ;;  %v1096_v25 = vpack.c.bf16 %v671_v24, %v669_v23  ;;  %v668_v26 = vld [vmem:[#allocation5 + $0x300] sm:$0xff]  ;;  %v617_v23 = vld [vmem:[#allocation5 + $0x168] sm:$0xff]  ;;  %v619_v24 = vld [vmem:[#allocation5 + $0x178] sm:$0xff] }
 0x1b5   :  { %1073 = vmatprep.subr.bf16.mxu1 %v1072_v40  ;;  %v1022_v40 = vpack.c.bf16 %v594_v36, %v592_v34  ;;  %v1098_v28 = vpack.c.bf16 %v670_v27, %v668_v26  ;;  %v606_v34 = vld [vmem:[#allocation5 + $0x110] sm:$0xff]  ;;  %v673_v36 = vld [vmem:[#allocation5 + $0x328] sm:$0xff]  ;;  %v616_v26 = vld [vmem:[#allocation5 + $0x160] sm:$0xff] }
 0x1b6   :  { %1019 = vmatpush1.bf16.msra.mxu0 %v1018_v30  ;;  %v607_v30 = vld [vmem:[#allocation5 + $0x118] sm:$0xff]  ;;  %v1100_v38 = vpack.c.bf16 %v675_v37, %v673_v36  ;;  %v618_v27 = vld [vmem:[#allocation5 + $0x170] sm:$0xff]  ;;  %v621_v36 = vld [vmem:[#allocation5 + $0x188] sm:$0xff] }
 0x1b7   :  { %1021 = vmatprep.subr.bf16.mxu0 %v1020_v35  ;;  %v1034_v35 = vpack.c.bf16 %v606_v34, %v604_v33  ;;  %v684_v33 = vld [vmem:[#allocation5 + $0x380] sm:$0xff]  ;;  %v686_v34 = vld [vmem:[#allocation5 + $0x390] sm:$0xff]  ;;  %v623_v37 = vld [vmem:[#allocation5 + $0x198] sm:$0xff] }
 0x1b8   :  { %1075 = vmatpush1.bf16.msra.mxu1 %v1074_v47 }
 0x1b9   :  { %1077 = vmatprep.subr.bf16.mxu1 %v1076_v54 }
 0x1ba   :  { %1023 = vmatpush1.bf16.msra.mxu0 %v1022_v40  ;;  %v674_v40 = vld [vmem:[#allocation5 + $0x330] sm:$0xff] }
 0x1bb   :  { %1025 = vmatprep.subr.bf16.mxu0 %v1024_v55  ;;  %v676_v55 = vld [vmem:[#allocation5 + $0x340] sm:$0xff] }
 0x1bc   :  { %1079 = vmatpush1.bf16.msra.mxu1 %v1078_v63  ;;  %v666_v63 = vld [vmem:[#allocation5 + $0x2f0] sm:$0xff] }
 0x1bd   :  { %1081 = vmatprep.subr.bf16.mxu1 %v1080_v11  ;;  %v1094_v3 = vpack.c.bf16 %v666_v63, %v664_v62  ;;  %v1028_v11 = vpack.c.bf16 %v603_v10, %v601_v7  ;;  %v612_v62 = vld [vmem:[#allocation5 + $0x140] sm:$0xff]  ;;  %v614_v63 = vld [vmem:[#allocation5 + $0x150] sm:$0xff]  ;;  %v681_v7 = vld [vmem:[#allocation5 + $0x368] sm:$0xff] }
 0x1be   :  { %1027 = vmatpush1.bf16.msra.mxu0 %v1026_v58  ;;  %v1106_v58 = vpack.c.bf16 %v678_v56, %v676_v55  ;;  %v683_v10 = vld [vmem:[#allocation5 + $0x378] sm:$0xff]  ;;  %v693_v55 = vld [vmem:[#allocation5 + $0x3c8] sm:$0xff] }
 0x1bf   :  { %1029 = vmatprep.subr.bf16.mxu0 %v1028_v11  ;;  %v1108_v11 = vpack.c.bf16 %v683_v10, %v681_v7 }
 0x1c0   :  { %1083 = vmatpush1.bf16.msra.mxu1 %v1082_v29  ;;  %v605_v29 = vld [vmem:[#allocation5 + $0x108] sm:$0xff] }
 0x1c1   :  { %1085 = vmatprep.subr.bf16.mxu1 %v1084_v31  ;;  %v1387_v31 = vsub.s32 0, %v1363_v50  ;;  %v1032_v32 = vpack.c.bf16 %v607_v30, %v605_v29  ;;  %v685_v29 = vld [vmem:[#allocation5 + $0x388] sm:$0xff]  ;;  %v687_v30 = vld [vmem:[#allocation5 + $0x398] sm:$0xff] }
 0x1c2   :  { %1031 = vmatpush1.bf16.msra.mxu0 %v1030_v22  ;;  %v1110_v22 = vpack.c.bf16 %v682_v17, %v680_v16  ;;  %v697_v16 = vld [vmem:[#allocation5 + $0x3e8] sm:$0xff]  ;;  %v699_v17 = vld [vmem:[#allocation5 + $0x3f8] sm:$0xff] }
 0x1c3   :  { %1033 = vmatprep.subr.bf16.mxu0 %v1032_v32  ;;  %v1112_v32 = vpack.c.bf16 %v687_v30, %v685_v29 }
 0x1c4   :  { %1087 = vmatpush1.bf16.msra.mxu1 %v1086_v39  ;;  %v672_v39 = vld [vmem:[#allocation5 + $0x320] sm:$0xff] }
 0x1c5   :  { %1089 = vmatprep.subr.bf16.mxu1 %v1088_v41  ;;  %v1102_v42 = vpack.c.bf16 %v674_v40, %v672_v39  ;;  %v620_v39 = vld [vmem:[#allocation5 + $0x180] sm:$0xff]  ;;  %v622_v40 = vld [vmem:[#allocation5 + $0x190] sm:$0xff] }
 0x1c6   :  { %1035 = vmatpush1.bf16.msra.mxu0 %v1034_v35  ;;  %v1114_v35 = vpack.c.bf16 %v686_v34, %v684_v33 }
 0x1c8   :  { %1091 = vmatpush1.bf16.msra.mxu1 %v1090_v44  ;;  %v1391_v44 = vsub.s32 1, %v1363_v50 }
 0x1c9   :  { %1093 = vmatprep.subr.bf16.mxu1 %v1092_v61  ;;  %v1040_v61 = vpack.c.bf16 %v615_v60, %v613_v59  ;;  %v692_v59 = vld [vmem:[#allocation5 + $0x3c0] sm:$0xff]  ;;  %v694_v60 = vld [vmem:[#allocation5 + $0x3d0] sm:$0xff] }
 0x1ca   :  { %v1122_v7 = vpack.c.bf16 %v694_v60, %v692_v59 }
 0x1cc   :  { %1095 = vmatpush1.bf16.msra.mxu1 %v1094_v3  ;;  %v1042_v3 = vpack.c.bf16 %v614_v63, %v612_v62  ;;  %v629_v62 = vld [vmem:[#allocation5 + $0x1c8] sm:$0xff]  ;;  %v631_v63 = vld [vmem:[#allocation5 + $0x1d8] sm:$0xff] }
 0x1cd   :  { %1097 = vmatprep.subr.bf16.mxu1 %v1096_v25  ;;  %v1044_v25 = vpack.c.bf16 %v619_v24, %v617_v23  ;;  %v1056_v10 = vpack.c.bf16 %v631_v63, %v629_v62  ;;  %v1124_v23 = vpack.c.bf16 %v699_v17, %v697_v16  ;;  %v696_v24 = vld [vmem:[#allocation5 + $0x3e0] sm:$0xff] }
 0x1d0   :  { %1099 = vmatpush1.bf16.msra.mxu1 %v1098_v28  ;;  %v1046_v28 = vpack.c.bf16 %v618_v27, %v616_v26  ;;  %v633_v26 = vld [vmem:[#allocation5 + $0x1e8] sm:$0xff]  ;;  %v632_v27 = vld [vmem:[#allocation5 + $0x1e0] sm:$0xff] }
 0x1d1   :  { %1101 = vmatprep.subr.bf16.mxu1 %v1100_v38  ;;  %v1048_v38 = vpack.c.bf16 %v623_v37, %v621_v36 }
 0x1d4   :  { %1103 = vmatpush1.bf16.msra.mxu1 %v1102_v42  ;;  %v689_v42 = vld [vmem:[#allocation5 + $0x3a8] sm:$0xff] }
 0x282   :  { %v379_v45 = vpop.f32.mrb[0].mxu1 }
 0x283   :  { %v384_v46 = vrot.slane %v379_v45, 2  ;;  %v993_v47 = vpop.f32.mrb[1].mxu1 }
 0x285   :  { %v386_v48 = vadd.f32 %v384_v46, %v379_v45  ;;  %v609_v45 = vld [vmem:[#allocation5 + $0x128] sm:$0xff]  ;;  %v611_v46 = vld [vmem:[#allocation5 + $0x138] sm:$0xff] }
 0x286   :  { %v1036_v47 = vpack.c.bf16 %v611_v46, %v609_v45  ;;  %v688_v45 = vld [vmem:[#allocation5 + $0x3a0] sm:$0xff] }
 0x287   :  { %v968_v49 = vmul.f32 -1.442695, %v386_v48  ;;  %v608_v48 = vld [vmem:[#allocation5 + $0x120] sm:$0xff] }
 0x288   :  { %1037 = vmatprep.subr.bf16.mxu0 %v1036_v47  ;;  %v690_v47 = vld [vmem:[#allocation5 + $0x3b0] sm:$0xff] }
 0x289   :  { %1139 = vpow2.f32 %v968_v49  ;;  %v610_v49 = vld [vmem:[#allocation5 + $0x130] sm:$0xff] }
 0x293   :  { %v1140_v51 = vpop.eup %1139 }
 0x294   :  { %v390_v54 = vadd.f32 1.0, %v1140_v51  ;;  %v1038_v51 = vpack.c.bf16 %v610_v49, %v608_v48  ;;  %v625_v48 = vld [vmem:[#allocation5 + $0x1a8] sm:$0xff]  ;;  %v627_v49 = vld [vmem:[#allocation5 + $0x1b8] sm:$0xff] }
 0x296   :  { %1141 = vrcp.f32 %v390_v54  ;;  %v1104_v54 = vpack.c.bf16 %v679_v53, %v677_v52  ;;  %1039 = vmatpush1.bf16.msra.mxu0 %v1038_v51  ;;  %v1118_v51 = vpack.c.bf16 %v690_v47, %v688_v45  ;;  %v1052_v52 = vpack.c.bf16 %v627_v49, %v625_v48  ;;  %v624_v53 = vld [vmem:[#allocation5 + $0x1a0] sm:$0xff] }
 0x297   :  { %1041 = vmatprep.subr.bf16.mxu0 %v1040_v61 }
 0x298   :  { %1105 = vmatprep.subr.bf16.mxu1 %v1104_v54  ;;  %v626_v54 = vld [vmem:[#allocation5 + $0x1b0] sm:$0xff] }
 0x299   :  { %1107 = vmatpush1.bf16.msra.mxu1 %v1106_v58  ;;  %v1054_v56 = vpack.c.bf16 %v626_v54, %v624_v53  ;;  %v695_v58 = vld [vmem:[#allocation5 + $0x3d8] sm:$0xff] }
 0x29a   :  { %1043 = vmatpush1.bf16.msra.mxu0 %v1042_v3  ;;  %1109 = vmatprep.subr.bf16.mxu1 %v1108_v11  ;;  %v1120_v61 = vpack.c.bf16 %v695_v58, %v693_v55  ;;  %v628_v3 = vld [vmem:[#allocation5 + $0x1c0] sm:$0xff]  ;;  %v630_v11 = vld [vmem:[#allocation5 + $0x1d0] sm:$0xff] }
 0x29b   :  { %1045 = vmatprep.subr.bf16.mxu0 %v1044_v25  ;;  %v698_v25 = vld [vmem:[#allocation5 + $0x3f0] sm:$0xff] }
 0x29c   :  { %v1126_v30 = vpack.c.bf16 %v698_v25, %v696_v24 }
 0x29d   :  { %1111 = vmatpush1.bf16.msra.mxu1 %v1110_v22  ;;  %v1058_v22 = vpack.c.bf16 %v630_v11, %v628_v3 }
 0x29e   :  { %1047 = vmatpush1.bf16.msra.mxu0 %v1046_v28  ;;  %1113 = vmatprep.subr.bf16.mxu1 %v1112_v32  ;;  %v634_v28 = vld [vmem:[#allocation5 + $0x1f0] sm:$0xff] }
 0x29f   :  { %1049 = vmatprep.subr.bf16.mxu0 %v1048_v38  ;;  %v1062_v32 = vpack.c.bf16 %v634_v28, %v632_v27 }
 0x2a0   :  { %v1142_v41 = vpop.eup %1141 }
 0x2a1   :  { %v396_v43 = vrot.slane %v1142_v41, %v1387_v31  ;;  %v1394_v57 = vrot.slane %v1142_v41, %v1391_v44  ;;  %v1050_v41 = vpack.c.bf16 %v622_v40, %v620_v39  ;;  %1115 = vmatpush1.bf16.msra.mxu1 %v1114_v35 }
 0x2a3   :  { %402 = vbcast.lane.b32.xlu1 %v396_v43, 264  ;;  %398 = vbcast.lane.b32.xlu0 %v396_v43, 256 }
 0x2a4   :  { %1051 = vmatpush1.bf16.msra.mxu0 %v1050_v41 }
 0x2a5   :  { %1053 = vmatprep.subr.bf16.mxu0 %v1052_v52 }
 0x2a7   :  { %417 = vbcast.lane.b32.xlu1 %v1394_v57, 256  ;;  %406 = vbcast.lane.b32.xlu0 %v396_v43, 272 }
 0x2a8   :  { %1055 = vmatpush1.bf16.msra.mxu0 %v1054_v56 }
 0x2a9   :  { %1057 = vmatprep.subr.bf16.mxu0 %v1056_v10 }
 0x2ab   :  { %421 = vbcast.lane.b32.xlu1 %v1394_v57, 264  ;;  %410 = vbcast.lane.b32.xlu0 %v396_v43, 280  ;;  %v691_v43 = vld [vmem:[#allocation5 + $0x3b8] sm:$0xff] }
 0x2ac   :  { %v1116_v46 = vpack.c.bf16 %v691_v43, %v689_v42  ;;  %1059 = vmatpush1.bf16.msra.mxu0 %v1058_v22 }
 0x2ae   :  { %1117 = vmatprep.subr.bf16.mxu1 %v1116_v46 }
 0x2af   :  { %425 = vbcast.lane.b32.xlu1 %v1394_v57, 272  ;;  %1119 = vmatpush1.bf16.msra.mxu1 %v1118_v51 }
 0x2b0   :  { %1121 = vmatprep.subr.bf16.mxu1 %v1120_v61 }
 0x2b3   :  { %429 = vbcast.lane.b32.xlu1 %v1394_v57, 280  ;;  %v635_v57 = vld [vmem:[#allocation5 + $0x1f8] sm:$0xff]  ;;  %1123 = vmatpush1.bf16.msra.mxu1 %v1122_v7 }
 0x2b4   :  { %v1060_v29 = vpack.c.bf16 %v635_v57, %v633_v26  ;;  %1125 = vmatprep.subr.bf16.mxu1 %v1124_v23 }
 0x2b6   :  { %1061 = vmatprep.subr.bf16.mxu0 %v1060_v29 }
 0x2b7   :  { %1127 = vmatpush1.bf16.msra.mxu1 %v1126_v30  ;;  %1063 = vmatpush1.bf16.msra.mxu0 %v1062_v32 }
 0x315   :  { %v403_v33 = vpop.permute.xlu1 %402  ;;  %v399_v34 = vpop.permute.xlu0 %398 }
 0x316   :  { %v433_v35 = vmul.f32 %v403_v33, %v1303_v8  ;;  %v434_v36 = vmul.f32 %v403_v33, %v1305_v9  ;;  %v431_v37 = vmul.f32 %v399_v34, %v1291_v2  ;;  %v432_v38 = vmul.f32 %v399_v34, %v1295_v4 }
 0x318   :  { %v449_v39 = vmax.f32 %v433_v35, 0.0  ;;  %v450_v40 = vmax.f32 %v434_v36, 0.0  ;;  %v447_v41 = vmax.f32 %v431_v37, 0.0  ;;  %v448_v42 = vmax.f32 %v432_v38, 0.0 }
 0x319   :  { %v418_v43 = vpop.permute.xlu1 %417  ;;  %v407_v45 = vpop.permute.xlu0 %406 }
 0x31a   :  { %v1405_v46 = vmul.f32 %v449_v39, %v1303_v8  ;;  %v1408_v47 = vmul.f32 %v450_v40, %v1305_v9  ;;  %v1411_v48 = vmul.f32 %v447_v41, %v1291_v2  ;;  %v1414_v49 = vmul.f32 %v448_v42, %v1295_v4 }
 0x31b   :  { %v439_v51 = vmul.f32 %v418_v43, %v1287_v0  ;;  %v440_v52 = vmul.f32 %v418_v43, %v1289_v1  ;;  %v435_v53 = vmul.f32 %v407_v45, %v1315_v14  ;;  %v436_v54 = vmul.f32 %v407_v45, %v1317_v15 }
 0x31c   :  { %v479_v8 = vadd.f32 %v1405_v46, %v1411_v48  ;;  %v488_v9 = vadd.f32 %v1408_v47, %v1414_v49  ;;  %v520_v3 = vmax.f32 %v1411_v48, %v1405_v46  ;;  %v529_v7 = vmax.f32 %v1414_v49, %v1408_v47 }
 0x31d   :  { %v455_v55 = vmax.f32 %v439_v51, 0.0  ;;  %v456_v2 = vmax.f32 %v440_v52, 0.0  ;;  %v451_v56 = vmax.f32 %v435_v53, 0.0  ;;  %v452_v58 = vmax.f32 %v436_v54, 0.0  ;;  %v422_v4 = vpop.permute.xlu1 %421  ;;  %v411_v59 = vpop.permute.xlu0 %410 }
 0x31e   :  { %v441_v60 = vmul.f32 %v422_v4, %v1297_v5  ;;  %v442_v61 = vmul.f32 %v422_v4, %v1299_v6  ;;  %v437_v62 = vmul.f32 %v411_v59, %v1327_v20  ;;  %v438_v63 = vmul.f32 %v411_v59, %v1329_v21 }
 0x31f   :  { %v1433_v10 = vmul.f32 %v451_v56, %v1315_v14  ;;  %v1436_v11 = vmul.f32 %v452_v58, %v1317_v15  ;;  %v1439_v24 = vmul.f32 %v455_v55, %v1287_v0  ;;  %v1442_v25 = vmul.f32 %v456_v2, %v1289_v1 }
 0x320   :  { %v457_v16 = vmax.f32 %v441_v60, 0.0  ;;  %v458_v17 = vmax.f32 %v442_v61, 0.0  ;;  %v453_v22 = vmax.f32 %v437_v62, 0.0  ;;  %v454_v23 = vmax.f32 %v438_v63, 0.0 }
 0x321   :  { %v480_v26 = vadd.f32 %v479_v8, %v1433_v10  ;;  %v489_v57 = vadd.f32 %v488_v9, %v1436_v11  ;;  %v426_v27 = vpop.permute.xlu1 %425  ;;  %v521_v1 = vmax.f32 %v520_v3, %v1433_v10  ;;  %v530_v29 = vmax.f32 %v529_v7, %v1436_v11 }
 0x322   :  { %v1447_v14 = vmul.f32 %v457_v16, %v1297_v5  ;;  %v1450_v15 = vmul.f32 %v458_v17, %v1299_v6  ;;  %v1453_v28 = vmul.f32 %v453_v22, %v1327_v20  ;;  %v1456_v0 = vmul.f32 %v454_v23, %v1329_v21 }
 0x323   :  { %v443_v30 = vmul.f32 %v426_v27, %v1311_v12  ;;  %v444_v32 = vmul.f32 %v426_v27, %v1313_v13 }
 0x324   :  { %v497_v5 = vadd.f32 %v1447_v14, %v1439_v24  ;;  %v506_v6 = vadd.f32 %v1450_v15, %v1442_v25  ;;  %v538_v20 = vmax.f32 %v1439_v24, %v1447_v14  ;;  %v547_v21 = vmax.f32 %v1442_v25, %v1450_v15 }
 0x325   :  { %v481_v33 = vadd.f32 %v480_v26, %v1453_v28  ;;  %v490_v34 = vadd.f32 %v489_v57, %v1456_v0  ;;  %v522_v35 = vmax.f32 %v521_v1, %v1453_v28  ;;  %v531_v36 = vmax.f32 %v530_v29, %v1456_v0  ;;  %v430_v37 = vpop.permute.xlu1 %429 }
 0x326   :  { %v459_v38 = vmax.f32 %v443_v30, 0.0  ;;  %v460_v39 = vmax.f32 %v444_v32, 0.0  ;;  %v445_v40 = vmul.f32 %v430_v37, %v1323_v18  ;;  %v446_v41 = vmul.f32 %v430_v37, %v1325_v19 }
 0x327   :  { %v482_v42 = vrot.slane %v481_v33, 4  ;;  %v523_v43 = vrot.slane %v522_v35, 4  ;;  %v532_v45 = vrot.slane %v531_v36, 4  ;;  %v491_v51 = vrot.slane %v490_v34, 4 }
 0x328   :  { %v1477_v52 = vmul.f32 %v459_v38, %v1311_v12  ;;  %v1480_v53 = vmul.f32 %v460_v39, %v1313_v13  ;;  %v461_v54 = vmax.f32 %v445_v40, 0.0  ;;  %v462_v8 = vmax.f32 %v446_v41, 0.0 }
 0x329   :  { %v533_v9 = vmax.f32 %v531_v36, %v532_v45  ;;  %v524_v55 = vmax.f32 %v522_v35, %v523_v43  ;;  %v492_v2 = vadd.f32 %v491_v51, %v490_v34  ;;  %v483_v56 = vadd.f32 %v482_v42, %v481_v33 }
 0x32a   :  { %v498_v58 = vadd.f32 %v497_v5, %v1477_v52  ;;  %v507_v4 = vadd.f32 %v506_v6, %v1480_v53  ;;  %v539_v59 = vmax.f32 %v538_v20, %v1477_v52  ;;  %v548_v60 = vmax.f32 %v547_v21, %v1480_v53 }
 0x32b   :  { %v1487_v12 = vmul.f32 %v461_v54, %v1323_v18  ;;  %v1490_v13 = vmul.f32 %v462_v8, %v1325_v19  ;;  %v534_v61 = vrot.slane %v533_v9, 2  ;;  %v525_v62 = vrot.slane %v524_v55, 2 }
 0x32c   :  { %v493_v63 = vrot.slane %v492_v2, 2  ;;  %v484_v3 = vrot.slane %v483_v56, 2 }
 0x32d   :  { %v499_v7 = vadd.f32 %v498_v58, %v1487_v12  ;;  %v508_v16 = vadd.f32 %v507_v4, %v1490_v13  ;;  %v540_v17 = vmax.f32 %v539_v59, %v1487_v12  ;;  %v549_v22 = vmax.f32 %v548_v60, %v1490_v13 }
 0x32e   :  { %v494_v23 = vadd.f32 %v493_v63, %v492_v2  ;;  %v485_v26 = vadd.f32 %v484_v3, %v483_v56  ;;  %v535_v19 = vmax.f32 %v533_v9, %v534_v61  ;;  %v526_v29 = vmax.f32 %v524_v55, %v525_v62 }
 0x32f   :  { %v500_v57 = vrot.slane %v499_v7, 4  ;;  %v541_v18 = vrot.slane %v540_v17, 4  ;;  %v550_v27 = vrot.slane %v549_v22, 4  ;;  %v509_v1 = vrot.slane %v508_v16, 4 }
 0x330   :  { %v495_v20 = vrot.slane %v494_v23, 1  ;;  %v486_v21 = vrot.slane %v485_v26, 1  ;;  %v536_v37 = vrot.slane %v535_v19, 1  ;;  %v527_v38 = vrot.slane %v526_v29, 1 }
 0x331   :  { %v551_v30 = vmax.f32 %v549_v22, %v550_v27  ;;  %v542_v32 = vmax.f32 %v540_v17, %v541_v18  ;;  %v510_v5 = vadd.f32 %v509_v1, %v508_v16  ;;  %v501_v6 = vadd.f32 %v500_v57, %v499_v7 }
 0x332   :  { %v496_v43 = vadd.f32 %v495_v20, %v494_v23  ;;  %v487_v45 = vadd.f32 %v486_v21, %v485_v26  ;;  %v537_v55 = vmax.f32 %v535_v19, %v536_v37  ;;  %v528_v2 = vmax.f32 %v526_v29, %v527_v38 }
 0x333   :  { %v552_v33 = vrot.slane %v551_v30, 2  ;;  %v543_v34 = vrot.slane %v542_v32, 2  ;;  %v511_v35 = vrot.slane %v510_v5, 2  ;;  %v502_v36 = vrot.slane %v501_v6, 2 }
 0x334   :  { %v517_v60 = vmul.f32 0.03125, %v496_v43  ;;  %v516_v61 = vmul.f32 0.03125, %v487_v45 }
 0x335   :  { %v553_v39 = vmax.f32 %v551_v30, %v552_v33  ;;  %v544_v40 = vmax.f32 %v542_v32, %v543_v34  ;;  %v512_v41 = vadd.f32 %v511_v35, %v510_v5  ;;  %v503_v42 = vadd.f32 %v502_v36, %v501_v6 }
 0x336   :  { %v1230_v6 = vmov 1966171168  }
 0x337   :  { %v554_v51 = vrot.slane %v553_v39, 1  ;;  %v545_v54 = vrot.slane %v544_v40, 1  ;;  %v513_v8 = vrot.slane %v512_v41, 1  ;;  %v504_v9 = vrot.slane %v503_v42, 1 }
 0x338   :  { %v858_v20 = vunpack.c.l.s4 %v1230_v6 }
 0x339   :  { %v555_v56 = vmax.f32 %v553_v39, %v554_v51  ;;  %v546_v58 = vmax.f32 %v544_v40, %v545_v54  ;;  %v514_v4 = vadd.f32 %v513_v8, %v512_v41  ;;  %v505_v59 = vadd.f32 %v504_v9, %v503_v42 }
 0x33a   :  { %v859_v21 = vunpack.c.0.s8 %v858_v20 }
 0x33b   :  { %v569_v62 = vsel %vm172_vm4, %v555_v56, %v537_v55  ;;  %v568_v63 = vsel %vm172_vm4, %v546_v58, %v528_v2  ;;  %v519_v3 = vmul.f32 0.03125, %v514_v4  ;;  %v518_v7 = vmul.f32 0.03125, %v505_v59 }
 0x33c   :  { %835 = vmatprep.mubr.f32.mxu1 %v569_v62  ;;  %v862_v34 = vsub.s32 %v859_v21, %v1363_v50 }
 0x33d   :  { %836 = vmatmul.mubr.f32.vlgmr.msra.gmra.mrb[2].mxu1 %v568_v63  ;;  %v561_v16 = vsel %vm172_vm4, %v519_v3, %v517_v60  ;;  %v560_v17 = vsel %vm172_vm4, %v518_v7, %v516_v61 }
 0x33e   :  { %764 = vmatprep.mubr.f32.mxu0 %v561_v16 }
 0x33f   :  { %765 = vmatmul.mubr.f32.vlgmr.msra.gmra.mrb[2].mxu0 %v560_v17 }
 0x410   :  { %v837_v22 = vpop.f32.mrb[2].mxu1 }
 0x411   :  { %v839_v23 = vpop.f32.mrb[3].mxu1 }
 0x412   :  { %v766_v26 = vpop.f32.mrb[2].mxu0 }
 0x413   :  { %v838_v57 = vadd.f32 %v837_v22, %v766_v26  ;;  %v768_v18 = vpop.f32.mrb[3].mxu0 }
 0x414   :  { %v840_v27 = vadd.f32 %v839_v23, %v768_v18 }
 0x415   :  { %v969_v1 = vmul.f32 -1.442695, %v838_v57 }
 0x416   :  { %v970_v19 = vmul.f32 -1.442695, %v840_v27 }
 0x417   :  { %1143 = vpow2.f32 %v969_v1 }
 0x418   :  { %1145 = vpow2.f32 %v970_v19 }
 0x421   :  { %v1144_v29 = vpop.eup %1143 }
 0x422   :  { %v1146_v30 = vpop.eup %1145  ;;  %v848_v32 = vadd.f32 1.0, %v1144_v29 }
 0x423   :  { %v849_v5 = vadd.f32 1.0, %v1146_v30 }
 0x424   :  { %1147 = vrcp.f32 %v848_v32 }
 0x425   :  { %1149 = vrcp.f32 %v849_v5 }
 0x42e   :  { %v1148_v33 = vpop.eup %1147 }
 0x42f   :  { %v1150_v35 = vpop.eup %1149 }
 0x430   :  { %v856_v36 = vcombine.low %v1148_v33, %v1150_v35 }
 0x432   :  { %v863_v37 = vrot.slane %v856_v36, %v862_v34 }
 0x434   :  { %v864_v38 = vcombine.high %v863_v37, %v863_v37  ;;  %v871_v39 = vrot.slane %v863_v37, %v862_v34 }
 0x436   :  { %v878_v40 = vrot.slane %v864_v38, %v862_v34  ;;  %v882_v41 = vrot.slane %v871_v39, %v1387_v31  ;;  %v886_v42 = vrot.slane %v871_v39, %v1391_v44 }
 0x438   :  { %v890_v43 = vrot.slane %v878_v40, %v1387_v31  ;;  %v894_v45 = vrot.slane %v878_v40, %v1391_v44  ;;  %v899_v51 = vmul.f32 %v882_v41, %v1411_v48  ;;  %v900_v54 = vmul.f32 %v886_v42, %v1414_v49 }
 0x439   :  { %v901_v50 = vmul.f32 %v882_v41, %v1405_v46  ;;  %v902_v8 = vmul.f32 %v886_v42, %v1408_v47  ;;  %v903_v9 = vmul.f32 %v882_v41, %v1433_v10  ;;  %v904_v55 = vmul.f32 %v886_v42, %v1436_v11 }
 0x43a   :  { %v905_v2 = vmul.f32 %v882_v41, %v1453_v28  ;;  %v906_v56 = vmul.f32 %v886_v42, %v1456_v0  ;;  %v907_v31 = vmul.f32 %v890_v43, %v1439_v24  ;;  %v908_v44 = vmul.f32 %v894_v45, %v1442_v25 }
 0x43b   :  { %v909_v58 = vmul.f32 %v890_v43, %v1447_v14  ;;  %v910_v4 = vmul.f32 %v894_v45, %v1450_v15  ;;  %v911_v59 = vmul.f32 %v890_v43, %v1477_v52  ;;  %v912_v60 = vmul.f32 %v894_v45, %v1480_v53 }
 0x43c   :  { %v913_v61 = vmul.f32 %v890_v43, %v1487_v12  ;;  %v914_v62 = vmul.f32 %v894_v45, %v1490_v13  ;;  %v915_v63 = vmul.f32 %v899_v51, %v1411_v48  ;;  %v916_v3 = vmul.f32 %v900_v54, %v1414_v49 }
 0x43d   :  { %v917_v7 = vmul.f32 %v901_v50, %v1405_v46  ;;  %v918_v16 = vmul.f32 %v902_v8, %v1408_v47  ;;  %v919_v17 = vmul.f32 %v903_v9, %v1433_v10  ;;  %v920_v22 = vmul.f32 %v904_v55, %v1436_v11 }
 0x43e   :  { %v921_v23 = vmul.f32 %v905_v2, %v1453_v28  ;;  %v922_v26 = vmul.f32 %v906_v56, %v1456_v0  ;;  %v923_v57 = vmul.f32 %v907_v31, %v1439_v24  ;;  %v924_v48 = vmul.f32 %v908_v44, %v1442_v25  ;;  %931 = vst [vmem:[#allocation7] sm:$0xff] %v915_v63 }
 0x43f   :  { %932 = vst [vmem:[#allocation7 + $0x8] sm:$0xff] %v916_v3  ;;  %v925_v46 = vmul.f32 %v909_v58, %v1447_v14  ;;  %v926_v47 = vmul.f32 %v910_v4, %v1450_v15  ;;  %v927_v49 = vmul.f32 %v911_v59, %v1477_v52  ;;  %v928_v10 = vmul.f32 %v912_v60, %v1480_v53 }
 0x440   :  { %933 = vst [vmem:[#allocation7 + $0x10] sm:$0xff] %v917_v7  ;;  %934 = vst [vmem:[#allocation7 + $0x18] sm:$0xff] %v918_v16  ;;  %v929_v11 = vmul.f32 %v913_v61, %v1487_v12  ;;  %v930_v24 = vmul.f32 %v914_v62, %v1490_v13 }
 0x441   :  { %935 = vst [vmem:[#allocation7 + $0x20] sm:$0xff] %v919_v17  ;;  %936 = vst [vmem:[#allocation7 + $0x28] sm:$0xff] %v920_v22 }
 0x442   :  { %937 = vst [vmem:[#allocation7 + $0x30] sm:$0xff] %v921_v23  ;;  %938 = vst [vmem:[#allocation7 + $0x38] sm:$0xff] %v922_v26 }
 0x443   :  { %939 = vst [vmem:[#allocation7 + $0x40] sm:$0xff] %v923_v57  ;;  %940 = vst [vmem:[#allocation7 + $0x48] sm:$0xff] %v924_v48 }
 0x444   :  { %941 = vst [vmem:[#allocation7 + $0x50] sm:$0xff] %v925_v46  ;;  %942 = vst [vmem:[#allocation7 + $0x58] sm:$0xff] %v926_v47 }
 0x445   :  { %943 = vst [vmem:[#allocation7 + $0x60] sm:$0xff] %v927_v49  ;;  %944 = vst [vmem:[#allocation7 + $0x68] sm:$0xff] %v928_v10 }
 0x446   :  { %945 = vst [vmem:[#allocation7 + $0x70] sm:$0xff] %v929_v11  ;;  %946 = vst [vmem:[#allocation7 + $0x78] sm:$0xff] %v930_v24 }
 0x447   :  { %1206 = shalt.err (!%p1203_p6)
}
 0x448   :  { %s1207_s28 = scalar_lea.hbm %s1556_s4, 2048 }
 0x449   :  { %p1208_p7 = scmp.ne.s32.totalorder %s1556_s4, %s1207_s28  ;;  %p1211_p8 = scmp.lt.u32.totalorder %s1207_s28, %s1556_s4 }
 0x44b   :  { %p1213_p9 = pnand %p1211_p8, %p1208_p7 }
 0x44d   :  { %1216 = shalt.err (!%p1213_p9)
}
 0x44e   :  { %958 = dma.vmem_to_hbm [thread:$0]  %s953_s22, 2048, %s1556_s4, [#allocation4], %s1224_s25, %s1224_s25, %s1225_s26  }
 0x44f   :  { %1221 = dma.done.wait [#allocation4], 2048  }
 0x450   :  { %1222 = vsyncadd [#allocation4], 4294965248 }
 0x451   :  { %962 = vsyncpa [#allocation3], 1 }
 0x452   :  { %963 = vsyncpa [#allocation6], 1 }
 0x453   :  { %964 = vsyncpa [#allocation4], 1 }

</bundles_post_ra>
